<compile_context>
chip_gen: v6e
topology: v6e:2x2x1
jax: 0.10.0
libtpu: 0.0.40
codegen_flags: <defaults>
</compile_context>

<pallas_src>
import functools

import numpy as np
import jax
import jax.numpy as jnp
from jax import lax
from jax.experimental import pallas as pl
from jax.experimental.pallas import tpu as pltpu

NF3 = 40      # Feature2Float input channels
KSIZE = 4     # Conv3d kernel_size (stride=1, padding=0)
LANES = 128   # TPU lane width


# ---------------------------------------------------------------- kernel ----

def _feature2float_kernel(x_ref, w_ref, bias_ref, o_ref, *,
                          batch, d_in, d_out, ksize, nlane):
    """Fused Conv3d(Cin -> 1, k=ksize, stride=1, pad=0) for all batches.

    x_ref    : (batch*d_in, H*W*Cin)   VMEM  bf16 channels-last input rows
    w_ref    : (H*W*Cin, ksize*nlane)  VMEM  bf16 kd-packed banded weights
    bias_ref : (1,)                    SMEM  f32 scalar bias
    o_ref    : (batch, d_out, nlane)   VMEM  f32 conv output (lane-padded)
    """
    # One MXU matmul over the full contraction, f32 accumulation.
    y = jnp.dot(x_ref[...], w_ref[...], preferred_element_type=jnp.float32)

    # (B*D, K*nlane) -> (B, D, K*nlane): pure re-grouping of 8-row tiles.
    y = y.reshape(batch, d_in, ksize * nlane)

    # Depth-tap fold: lane slices are 128-aligned -> whole-vreg VPU adds.
    acc = y[:, 0:d_out, 0:nlane]
    for kd in range(1, ksize):
        acc = acc + y[:, kd:kd + d_out, kd * nlane:(kd + 1) * nlane]

    o_ref[...] = acc + bias_ref[0]


# ----------------------------------------------------- host-side plumbing ----

def pack_feature2float_weight(weight, H, W):
    """Pack torch-layout Conv3d weight (1, Cin, K, K, K) into the banded,
    lane-padded matmul matrix Wp of shape (H*W*Cin, K*128):

      Wp[(h*W + w)*Cin + c, kd*128 + ho*Wo + wo] = weight[0, c, kd, h-ho, w-wo]

    (zero outside the kernel window and in the padded lanes).  Built once on
    the host, stored in bf16 (MXU-native, half the HBM->VMEM bytes).
    """
    w_np = np.asarray(jax.device_get(weight), dtype=np.float32)
    cout, cin, k, _, _ = w_np.shape
    assert cout == 1 and k == KSIZE
    ho_n, wo_n = H - k + 1, W - k + 1
    hw_out = ho_n * wo_n
    nlane = -(-hw_out // LANES) * LANES          # lane-pad each kd block
    wp = np.zeros((H * W * cin, k * nlane), dtype=np.float32)
    for kd in range(k):
        for ho in range(ho_n):
            for wo in range(wo_n):
                col = kd * nlane + ho * wo_n + wo
                for kh in range(k):
                    for kw in range(k):
                        r0 = ((ho + kh) * W + (wo + kw)) * cin
                        wp[r0:r0 + cin, col] = w_np[0, :, kd, kh, kw]
    return jnp.asarray(wp, dtype=jnp.bfloat16)


def feature2float_forward(x_ncdhw, w_packed, bias):
    """x_ncdhw: (B, Cin, D, H, W) -> (B, 1, Do, Ho, Wo), matching the module."""
    B, Cin, D, H, W = x_ncdhw.shape
    K = KSIZE
    Do, Ho, Wo = D - K + 1, H - K + 1, W - K + 1
    hwc, hw_out = H * W * Cin, Ho * Wo
    nlane = w_packed.shape[1] // K
    assert w_packed.shape == (hwc, K * nlane) and nlane >= hw_out

    # NCDHW -> channels-last rows (b*d, h*w*c), bf16 for the MXU.
    # TODO(synk): produce this layout upstream to avoid the extra XLA
    # relayout pass over the activation in HBM.
    x2 = jnp.transpose(x_ncdhw, (0, 2, 3, 4, 1)).reshape(B * D, hwc)
    x2 = x2.astype(jnp.bfloat16)

    kernel = functools.partial(_feature2float_kernel, batch=B, d_in=D,
                               d_out=Do, ksize=K, nlane=nlane)

    out = pl.pallas_call(
        kernel,
        out_shape=jax.ShapeDtypeStruct((B, Do, nlane), jnp.float32),
        in_specs=[
            pl.BlockSpec(memory_space=pltpu.MemorySpace.VMEM),   # input rows
            pl.BlockSpec(memory_space=pltpu.MemorySpace.VMEM),   # banded Wp
            pl.BlockSpec(memory_space=pltpu.MemorySpace.SMEM),   # scalar bias
        ],
        out_specs=pl.BlockSpec(memory_space=pltpu.MemorySpace.VMEM),
    )(x2, w_packed, bias)

    # Strip lane padding, back to PyTorch NCDHW (B, 1, Do, Ho, Wo).
    return out[..., :hw_out].reshape(B, Do, Ho, Wo)[:, None, :, :, :]


# -------------------------------------------------------------------- main ---

if __name__ == "__main__":
    key = jax.random.PRNGKey(0)
    kx, kw, kb = jax.random.split(key, 3)

    # Small shapes consistent with the module: batch=2, channels=nf3=40,
    # 8^3 feature volume -> 5^3 output.
    B, Cin, D, H, W = 2, NF3, 8, 8, 8
    x = jax.random.normal(kx, (B, Cin, D, H, W), jnp.float32)

    # PyTorch Conv3d default init: U(-1/sqrt(fan_in), 1/sqrt(fan_in)).
    fan_in = Cin * KSIZE ** 3
    bound = 1.0 / np.sqrt(fan_in)
    weight = jax.random.uniform(kw, (1, Cin, KSIZE, KSIZE, KSIZE), jnp.float32,
                                -bound, bound)
    bias = jax.random.uniform(kb, (1,), jnp.float32, -bound, bound)

    w_packed = pack_feature2float_weight(weight, H, W)

    fwd = jax.jit(feature2float_forward)
    out = jax.block_until_ready(fwd(x, w_packed, bias))

    Do = D - KSIZE + 1
    assert out.shape == (B, 1, Do, Do, Do), out.shape
    assert bool(jnp.all(jnp.isfinite(out)))

    # Cross-check against XLA's f32 conv (kernel uses bf16 operands with f32
    # accumulation -> comfortably inside the 1e-2 tolerance).
    ref = lax.conv_general_dilated(
        x, weight, window_strides=(1, 1, 1), padding="VALID",
        dimension_numbers=("NCDHW", "OIDHW", "NCDHW"),
        precision=lax.Precision.HIGHEST) + bias[0]
    max_err = float(jnp.max(jnp.abs(out - ref)))
    assert bool(jnp.allclose(out, ref, atol=1e-2, rtol=1e-2)), max_err

    print("KERNEL_OK")
</pallas_src>

<mosaic_0001>
module attributes {stable_mosaic.version = 11 : i64} {
  func.func @_feature2float_kernel(%arg0: memref<16x2560xbf16, #tpu.memory_space<vmem>>, %arg1: memref<2560x512xbf16, #tpu.memory_space<vmem>>, %arg2: memref<1xf32, #tpu.memory_space<smem>>, %arg3: memref<2x5x128xf32, #tpu.memory_space<vmem>>) attributes {dimension_semantics = [], scalar_prefetch = 0 : i64, scratch_operands = 0 : i64, tpu.core_type = #tpu.core_type<tc>} {
    %c0 = arith.constant 0 : index
    %c0_0 = arith.constant 0 : index
    %0 = vector.load %arg0[%c0, %c0_0] : memref<16x2560xbf16, #tpu.memory_space<vmem>>, vector<16x2560xbf16>
    %c0_1 = arith.constant 0 : index
    %c0_2 = arith.constant 0 : index
    %1 = vector.load %arg1[%c0_1, %c0_2] : memref<2560x512xbf16, #tpu.memory_space<vmem>>, vector<2560x512xbf16>
    %cst = arith.constant dense<0.000000e+00> : vector<16x512xf32>
    %2 = tpu.matmul %0, %1, %cst {dimension_numbers = #tpu.dot_dimension_numbers<[1], [0], [0], [1], [0, 0, 1, 1], [], []>} : vector<16x2560xbf16>, vector<2560x512xbf16>, vector<16x512xf32> -> vector<16x512xf32>
    %3 = vector.shape_cast %2 : vector<16x512xf32> to vector<2x8x512xf32>
    %4 = vector.extract_strided_slice %3 {offsets = [0, 0, 0], sizes = [2, 5, 128], strides = [1, 1, 1]} : vector<2x8x512xf32> to vector<2x5x128xf32>
    %5 = vector.extract_strided_slice %3 {offsets = [0, 1, 128], sizes = [2, 5, 128], strides = [1, 1, 1]} : vector<2x8x512xf32> to vector<2x5x128xf32>
    %6 = arith.addf %4, %5 : vector<2x5x128xf32>
    %7 = vector.extract_strided_slice %3 {offsets = [0, 2, 256], sizes = [2, 5, 128], strides = [1, 1, 1]} : vector<2x8x512xf32> to vector<2x5x128xf32>
    %8 = arith.addf %6, %7 : vector<2x5x128xf32>
    %9 = vector.extract_strided_slice %3 {offsets = [0, 3, 384], sizes = [2, 5, 128], strides = [1, 1, 1]} : vector<2x8x512xf32> to vector<2x5x128xf32>
    %10 = arith.addf %8, %9 : vector<2x5x128xf32>
    %c0_3 = arith.constant 0 : index
    %11 = memref.load %arg2[%c0_3] : memref<1xf32, #tpu.memory_space<smem>>
    %12 = vector.broadcast %11 : f32 to vector<2x5x128xf32>
    %13 = arith.addf %10, %12 : vector<2x5x128xf32>
    %c0_4 = arith.constant 0 : index
    %c0_5 = arith.constant 0 : index
    %c0_6 = arith.constant 0 : index
    %14 = vector.load %arg3[%c0_4, %c0_5, %c0_6] : memref<2x5x128xf32, #tpu.memory_space<vmem>>, vector<2x5x128xf32>
    tpu.vector_store %arg3[%c0_4, %c0_5, %c0_6], %13 {strides = array<i32>} : memref<2x5x128xf32, #tpu.memory_space<vmem>>, vector<2x5x128xf32>,
    return
  }
}

</mosaic_0001>

<bundles_post_ra>
// kernel: feature2float_forward.1
= control target key start
LH: loop header
LB: loop body
LE: loop exit
PB: predicated region body
PF: predicated region fallthrough
CT: control target
= control target key end

     0   :  { %9 = vsyncpa [#allocation4], 0  ;;  %s6579_s12 = smov [#allocation3]   ;;  %s6812_s0 = inlined_call_operand.vmem [shape: bf16[16,2560], index: 0, kind: input, shape index: {}]   ;;  %s6813_s1 = inlined_call_operand.hbm [shape: bf16[2560,512], index: 1, kind: input, shape index: {}]   ;;  %s6814_s2 = inlined_call_operand.<no memory space> [shape: f32[1], index: 2, kind: input, shape index: {}]   ;;  %s6815_s3 = inlined_call_operand.vmem [shape: f32[2,5,128], index: 3, kind: output, shape index: {}]  }
   0x1   :  { %s17_s13 = sshll.u32 %s6579_s12, 4  ;;  %s18_s13 = int_to_ptr.vmem [resolvable:$true] %s17_s13 }
   0x2   :  { %s6565_s14 = scalar_lea.vmem %s18_s13, 81920  ;;  %p6570_p1 = scmp.lt.s32.totalorder %s18_s13, %s18_s13 }
   0x3   :  { %p6566_p0 = scmp.ne.s32.totalorder %s18_s13, %s6565_s14  ;;  %p6571_p2 = scmp.lt.s32.totalorder %s6565_s14, %s6565_s14 }
   0x5   :  { %p6572_p3 = por %p6571_p2, %p6570_p1 }
   0x7   :  { %p6573_p4 = pnand %p6572_p3, %p6566_p0 }
   0x9   :  { %6576 = shalt.err (!%p6573_p4)
}
   0xa   :  { %s6580_s15 = smov 256   ;;  %s6581_s16 = smov 16  }
   0xb   :  { %23 = dma.hbm_to_vmem [thread:$0]  %s6813_s1, 81920, %s18_s13, [#allocation4], %s6580_s15, %s6580_s15, %s6581_s16  }
   0xc   :  { %6577 = dma.done.wait [#allocation4], 81920  }
   0xd   :  { %6578 = vsyncadd [#allocation4], 4294885376  ;;  %v5547_v0 = vld [vmem:[#allocation3 + $0xe4] ss:$16 sps:$4 sm:$0xff]   ;;  %v5551_v2 = vld [vmem:[#allocation3 + $0xe0] ss:$16 sps:$4 sm:$0xff]  }
   0xe   :  { %v5549_v1 = vld [vmem:[#allocation3 + $0x2e4] ss:$16 sps:$4 sm:$0xff]   ;;  %3989 = vmatprep.subr.bf16.mxu0 %v5547_v0  ;;  %v5552_v3 = vld [vmem:[#allocation3 + $0x2e0] ss:$16 sps:$4 sm:$0xff]   ;;  %v5648_v51 = vld [vmem:[%s6812_s0 + $0xc] ss:$80 sps:$4 sm:$0xff]  }
   0xf   :  { %4032 = vmatprep.subr.bf16.mxu1 %v5549_v1  ;;  %v5553_v4 = vld [vmem:[#allocation3 + $0xc4] ss:$16 sps:$4 sm:$0xff]   ;;  %3990 = vmatpush1.bf16.msra.mxu0 %v5551_v2  ;;  %v5557_v6 = vld [vmem:[#allocation3 + $0xc0] ss:$16 sps:$4 sm:$0xff]  }
  0x10   :  { %4033 = vmatpush1.bf16.msra.mxu1 %v5552_v3  ;;  %v5555_v5 = vld [vmem:[#allocation3 + $0x2c4] ss:$16 sps:$4 sm:$0xff]   ;;  %3991 = vmatprep.subr.bf16.mxu0 %v5553_v4  ;;  %v5558_v7 = vld [vmem:[#allocation3 + $0x2c0] ss:$16 sps:$4 sm:$0xff]  }
  0x11   :  { %4034 = vmatprep.subr.bf16.mxu1 %v5555_v5  ;;  %v5559_v8 = vld [vmem:[#allocation3 + $0xa4] ss:$16 sps:$4 sm:$0xff]   ;;  %v5563_v10 = vld [vmem:[#allocation3 + $0xa0] ss:$16 sps:$4 sm:$0xff]   ;;  %4064 = vmatprep.mubr.bf16.mxu1 %v5648_v51  ;;  %v5646_v5 = vld [vmem:[%s6812_s0 + $0x8] ss:$80 sps:$4 sm:$0xff]  }
  0x12   :  { %v5561_v9 = vld [vmem:[#allocation3 + $0x2a4] ss:$16 sps:$4 sm:$0xff]   ;;  %v5564_v11 = vld [vmem:[#allocation3 + $0x2a0] ss:$16 sps:$4 sm:$0xff]  }
  0x13   :  { %3992 = vmatpush1.bf16.msra.mxu0 %v5557_v6  ;;  %v5565_v12 = vld [vmem:[#allocation3 + $0x84] ss:$16 sps:$4 sm:$0xff]   ;;  %v5569_v14 = vld [vmem:[#allocation3 + $0x80] ss:$16 sps:$4 sm:$0xff]  }
  0x14   :  { %4035 = vmatpush1.bf16.msra.mxu1 %v5558_v7  ;;  %3993 = vmatprep.subr.bf16.mxu0 %v5559_v8  ;;  %v5567_v13 = vld [vmem:[#allocation3 + $0x284] ss:$16 sps:$4 sm:$0xff]   ;;  %v5570_v15 = vld [vmem:[#allocation3 + $0x280] ss:$16 sps:$4 sm:$0xff]  }
  0x15   :  { %4036 = vmatprep.subr.bf16.mxu1 %v5561_v9  ;;  %v5571_v16 = vld [vmem:[#allocation3 + $0x64] ss:$16 sps:$4 sm:$0xff]   ;;  %v5575_v18 = vld [vmem:[#allocation3 + $0x60] ss:$16 sps:$4 sm:$0xff]  }
  0x16   :  { %v5573_v17 = vld [vmem:[#allocation3 + $0x264] ss:$16 sps:$4 sm:$0xff]   ;;  %v5576_v19 = vld [vmem:[#allocation3 + $0x260] ss:$16 sps:$4 sm:$0xff]  }
  0x17   :  { %3994 = vmatpush1.bf16.msra.mxu0 %v5563_v10  ;;  %v5577_v20 = vld [vmem:[#allocation3 + $0x44] ss:$16 sps:$4 sm:$0xff]   ;;  %v5581_v22 = vld [vmem:[#allocation3 + $0x40] ss:$16 sps:$4 sm:$0xff]  }
  0x18   :  { %4037 = vmatpush1.bf16.msra.mxu1 %v5564_v11  ;;  %3995 = vmatprep.subr.bf16.mxu0 %v5565_v12  ;;  %v5579_v21 = vld [vmem:[#allocation3 + $0x244] ss:$16 sps:$4 sm:$0xff]   ;;  %v5582_v23 = vld [vmem:[#allocation3 + $0x240] ss:$16 sps:$4 sm:$0xff]  }
  0x19   :  { %4038 = vmatprep.subr.bf16.mxu1 %v5567_v13  ;;  %v5583_v24 = vld [vmem:[#allocation3 + $0x24] ss:$16 sps:$4 sm:$0xff]   ;;  %v5587_v26 = vld [vmem:[#allocation3 + $0x20] ss:$16 sps:$4 sm:$0xff]  }
  0x1a   :  { %v5585_v25 = vld [vmem:[#allocation3 + $0x224] ss:$16 sps:$4 sm:$0xff]   ;;  %v5588_v27 = vld [vmem:[#allocation3 + $0x220] ss:$16 sps:$4 sm:$0xff]  }
  0x1b   :  { %3996 = vmatpush1.bf16.msra.mxu0 %v5569_v14  ;;  %v5589_v28 = vld [vmem:[#allocation3 + $0x4] ss:$16 sps:$4 sm:$0xff]   ;;  %v5593_v30 = vld [vmem:[#allocation3] ss:$16 sps:$4 sm:$0xff]  }
  0x1c   :  { %4039 = vmatpush1.bf16.msra.mxu1 %v5570_v15  ;;  %3997 = vmatprep.subr.bf16.mxu0 %v5571_v16  ;;  %v5591_v29 = vld [vmem:[#allocation3 + $0x204] ss:$16 sps:$4 sm:$0xff]   ;;  %v5594_v31 = vld [vmem:[#allocation3 + $0x200] ss:$16 sps:$4 sm:$0xff]  }
  0x1d   :  { %4040 = vmatprep.subr.bf16.mxu1 %v5573_v17  ;;  %v5595_v32 = vld [vmem:[#allocation3 + $0x1e4] ss:$16 sps:$4 sm:$0xff]   ;;  %v5599_v34 = vld [vmem:[#allocation3 + $0x1e0] ss:$16 sps:$4 sm:$0xff]  }
  0x1e   :  { %v5597_v33 = vld [vmem:[#allocation3 + $0x3e4] ss:$16 sps:$4 sm:$0xff]   ;;  %v5600_v35 = vld [vmem:[#allocation3 + $0x3e0] ss:$16 sps:$4 sm:$0xff]  }
  0x1f   :  { %3998 = vmatpush1.bf16.msra.mxu0 %v5575_v18  ;;  %v5601_v36 = vld [vmem:[#allocation3 + $0x1c4] ss:$16 sps:$4 sm:$0xff]   ;;  %v5605_v38 = vld [vmem:[#allocation3 + $0x1c0] ss:$16 sps:$4 sm:$0xff]  }
  0x20   :  { %4041 = vmatpush1.bf16.msra.mxu1 %v5576_v19  ;;  %3999 = vmatprep.subr.bf16.mxu0 %v5577_v20  ;;  %v5603_v37 = vld [vmem:[#allocation3 + $0x3c4] ss:$16 sps:$4 sm:$0xff]   ;;  %v5606_v39 = vld [vmem:[#allocation3 + $0x3c0] ss:$16 sps:$4 sm:$0xff]  }
  0x21   :  { %4042 = vmatprep.subr.bf16.mxu1 %v5579_v21  ;;  %v5607_v40 = vld [vmem:[#allocation3 + $0x1a4] ss:$16 sps:$4 sm:$0xff]   ;;  %v5611_v42 = vld [vmem:[#allocation3 + $0x1a0] ss:$16 sps:$4 sm:$0xff]  }
  0x22   :  { %v5609_v41 = vld [vmem:[#allocation3 + $0x3a4] ss:$16 sps:$4 sm:$0xff]   ;;  %v5612_v43 = vld [vmem:[#allocation3 + $0x3a0] ss:$16 sps:$4 sm:$0xff]  }
  0x23   :  { %4000 = vmatpush1.bf16.msra.mxu0 %v5581_v22  ;;  %v5613_v44 = vld [vmem:[#allocation3 + $0x184] ss:$16 sps:$4 sm:$0xff]   ;;  %v5617_v46 = vld [vmem:[#allocation3 + $0x180] ss:$16 sps:$4 sm:$0xff]  }
  0x24   :  { %4043 = vmatpush1.bf16.msra.mxu1 %v5582_v23  ;;  %4001 = vmatprep.subr.bf16.mxu0 %v5583_v24  ;;  %v5615_v45 = vld [vmem:[#allocation3 + $0x384] ss:$16 sps:$4 sm:$0xff]   ;;  %v5618_v47 = vld [vmem:[#allocation3 + $0x380] ss:$16 sps:$4 sm:$0xff]  }
  0x25   :  { %4044 = vmatprep.subr.bf16.mxu1 %v5585_v25  ;;  %v5619_v48 = vld [vmem:[#allocation3 + $0x164] ss:$16 sps:$4 sm:$0xff]   ;;  %v5623_v52 = vld [vmem:[#allocation3 + $0x160] ss:$16 sps:$4 sm:$0xff]  }
  0x26   :  { %v5645_v49 = vld [vmem:[%s6812_s0 + $0x4] ss:$80 sps:$4 sm:$0xff]   ;;  %v5624_v53 = vld [vmem:[#allocation3 + $0x360] ss:$16 sps:$4 sm:$0xff]  }
  0x27   :  { %4002 = vmatpush1.bf16.msra.mxu0 %v5587_v26  ;;  %v5621_v50 = vld [vmem:[#allocation3 + $0x364] ss:$16 sps:$4 sm:$0xff]   ;;  %4021 = vmatprep.mubr.bf16.mxu0 %v5645_v49  ;;  %v5629_v56 = vld [vmem:[#allocation3 + $0x140] ss:$16 sps:$4 sm:$0xff]  }
  0x28   :  { %4045 = vmatpush1.bf16.msra.mxu1 %v5588_v27  ;;  %4003 = vmatprep.subr.bf16.mxu0 %v5589_v28  ;;  %v5625_v54 = vld [vmem:[#allocation3 + $0x144] ss:$16 sps:$4 sm:$0xff]   ;;  %v5630_v57 = vld [vmem:[#allocation3 + $0x340] ss:$16 sps:$4 sm:$0xff]  }
  0x29   :  { %4046 = vmatprep.subr.bf16.mxu1 %v5591_v29  ;;  %v5627_v55 = vld [vmem:[#allocation3 + $0x344] ss:$16 sps:$4 sm:$0xff]   ;;  %v5635_v60 = vld [vmem:[#allocation3 + $0x120] ss:$16 sps:$4 sm:$0xff]  }
  0x2a   :  { %v5631_v58 = vld [vmem:[#allocation3 + $0x124] ss:$16 sps:$4 sm:$0xff]   ;;  %v5636_v61 = vld [vmem:[#allocation3 + $0x320] ss:$16 sps:$4 sm:$0xff]  }
  0x2b   :  { %4004 = vmatpush1.bf16.msra.mxu0 %v5593_v30  ;;  %v5633_v59 = vld [vmem:[#allocation3 + $0x324] ss:$16 sps:$4 sm:$0xff]   ;;  %v5641_v0 = vld [vmem:[#allocation3 + $0x100] ss:$16 sps:$4 sm:$0xff]  }
  0x2c   :  { %4047 = vmatpush1.bf16.msra.mxu1 %v5594_v31  ;;  %4005 = vmatprep.subr.bf16.mxu0 %v5595_v32  ;;  %v5637_v62 = vld [vmem:[#allocation3 + $0x104] ss:$16 sps:$4 sm:$0xff]   ;;  %v5642_v1 = vld [vmem:[#allocation3 + $0x300] ss:$16 sps:$4 sm:$0xff]  }
  0x2d   :  { %4048 = vmatprep.subr.bf16.mxu1 %v5597_v33  ;;  %v5639_v63 = vld [vmem:[#allocation3 + $0x304] ss:$16 sps:$4 sm:$0xff]   ;;  %v5643_v4 = vld [vmem:[%s6812_s0] ss:$80 sps:$4 sm:$0xff]  }
  0x2e   :  { %v5651_v2 = vld [vmem:[#allocation3 + $0x4e4] ss:$16 sps:$4 sm:$0xff]   ;;  %v5649_v6 = vld [vmem:[#allocation3 + $0x4e0] ss:$16 sps:$4 sm:$0xff]  }
  0x2f   :  { %4006 = vmatpush2.bf16.msra.mxu0 %v5599_v34  ;;  %v5654_v3 = vld [vmem:[#allocation3 + $0x6e4] ss:$16 sps:$4 sm:$0xff]   ;;  %v5652_v7 = vld [vmem:[#allocation3 + $0x6e0] ss:$16 sps:$4 sm:$0xff]  }
  0x30   :  { %4049 = vmatpush2.bf16.msra.mxu1 %v5600_v35  ;;  %4007 = vmatprep.subr.bf16.mxu0 %v5601_v36  ;;  %v5657_v8 = vld [vmem:[#allocation3 + $0x4c4] ss:$16 sps:$4 sm:$0xff]   ;;  %v5655_v10 = vld [vmem:[#allocation3 + $0x4c0] ss:$16 sps:$4 sm:$0xff]   ;;  %v5750_v35 = vld [vmem:[%s6812_s0 + $0x1c] ss:$80 sps:$4 sm:$0xff]  }
  0x31   :  { %4050 = vmatprep.subr.bf16.mxu1 %v5603_v37  ;;  %v5660_v9 = vld [vmem:[#allocation3 + $0x6c4] ss:$16 sps:$4 sm:$0xff]   ;;  %v5658_v11 = vld [vmem:[#allocation3 + $0x6c0] ss:$16 sps:$4 sm:$0xff]  }
  0x32   :  { %v5663_v12 = vld [vmem:[#allocation3 + $0x4a4] ss:$16 sps:$4 sm:$0xff]   ;;  %v5661_v14 = vld [vmem:[#allocation3 + $0x4a0] ss:$16 sps:$4 sm:$0xff]  }
  0x33   :  { %4008 = vmatpush2.bf16.msra.mxu0 %v5605_v38  ;;  %v5666_v13 = vld [vmem:[#allocation3 + $0x6a4] ss:$16 sps:$4 sm:$0xff]   ;;  %v5664_v15 = vld [vmem:[#allocation3 + $0x6a0] ss:$16 sps:$4 sm:$0xff]  }
  0x34   :  { %4051 = vmatpush2.bf16.msra.mxu1 %v5606_v39  ;;  %4009 = vmatprep.subr.bf16.mxu0 %v5607_v40  ;;  %v5669_v16 = vld [vmem:[#allocation3 + $0x484] ss:$16 sps:$4 sm:$0xff]   ;;  %v5667_v18 = vld [vmem:[#allocation3 + $0x480] ss:$16 sps:$4 sm:$0xff]  }
  0x35   :  { %4052 = vmatprep.subr.bf16.mxu1 %v5609_v41  ;;  %v5672_v17 = vld [vmem:[#allocation3 + $0x684] ss:$16 sps:$4 sm:$0xff]   ;;  %v5670_v19 = vld [vmem:[#allocation3 + $0x680] ss:$16 sps:$4 sm:$0xff]  }
  0x36   :  { %v5675_v20 = vld [vmem:[#allocation3 + $0x464] ss:$16 sps:$4 sm:$0xff]   ;;  %v5673_v22 = vld [vmem:[#allocation3 + $0x460] ss:$16 sps:$4 sm:$0xff]  }
  0x37   :  { %4010 = vmatpush2.bf16.msra.mxu0 %v5611_v42  ;;  %v5678_v21 = vld [vmem:[#allocation3 + $0x664] ss:$16 sps:$4 sm:$0xff]   ;;  %v5676_v23 = vld [vmem:[#allocation3 + $0x660] ss:$16 sps:$4 sm:$0xff]  }
  0x38   :  { %4053 = vmatpush2.bf16.msra.mxu1 %v5612_v43  ;;  %4011 = vmatprep.subr.bf16.mxu0 %v5613_v44  ;;  %v5681_v24 = vld [vmem:[#allocation3 + $0x444] ss:$16 sps:$4 sm:$0xff]   ;;  %v5679_v26 = vld [vmem:[#allocation3 + $0x440] ss:$16 sps:$4 sm:$0xff]  }
  0x39   :  { %4054 = vmatprep.subr.bf16.mxu1 %v5615_v45  ;;  %v5684_v25 = vld [vmem:[#allocation3 + $0x644] ss:$16 sps:$4 sm:$0xff]   ;;  %v5682_v27 = vld [vmem:[#allocation3 + $0x640] ss:$16 sps:$4 sm:$0xff]  }
  0x3a   :  { %v5687_v28 = vld [vmem:[#allocation3 + $0x424] ss:$16 sps:$4 sm:$0xff]   ;;  %v5685_v30 = vld [vmem:[#allocation3 + $0x420] ss:$16 sps:$4 sm:$0xff]  }
  0x3b   :  { %4012 = vmatpush2.bf16.msra.mxu0 %v5617_v46  ;;  %v5690_v29 = vld [vmem:[#allocation3 + $0x624] ss:$16 sps:$4 sm:$0xff]   ;;  %v5688_v31 = vld [vmem:[#allocation3 + $0x620] ss:$16 sps:$4 sm:$0xff]  }
  0x3c   :  { %4055 = vmatpush2.bf16.msra.mxu1 %v5618_v47  ;;  %4013 = vmatprep.subr.bf16.mxu0 %v5619_v48  ;;  %v5693_v32 = vld [vmem:[#allocation3 + $0x404] ss:$16 sps:$4 sm:$0xff]   ;;  %v5691_v36 = vld [vmem:[#allocation3 + $0x400] ss:$16 sps:$4 sm:$0xff]  }
  0x3d   :  { %4056 = vmatprep.subr.bf16.mxu1 %v5621_v50  ;;  %v5696_v33 = vld [vmem:[#allocation3 + $0x604] ss:$16 sps:$4 sm:$0xff]   ;;  %v5694_v37 = vld [vmem:[#allocation3 + $0x600] ss:$16 sps:$4 sm:$0xff]  }
  0x3e   :  { %v5747_v34 = vld [vmem:[%s6812_s0 + $0x14] ss:$80 sps:$4 sm:$0xff]   ;;  %v5697_v40 = vld [vmem:[#allocation3 + $0x5e0] ss:$16 sps:$4 sm:$0xff]  }
  0x3f   :  { %4014 = vmatpush2.bf16.msra.mxu0 %v5623_v52  ;;  %v5699_v38 = vld [vmem:[#allocation3 + $0x5e4] ss:$16 sps:$4 sm:$0xff]   ;;  %v5700_v41 = vld [vmem:[#allocation3 + $0x7e0] ss:$16 sps:$4 sm:$0xff]  }
  0x40   :  { %4057 = vmatpush2.bf16.msra.mxu1 %v5624_v53  ;;  %4015 = vmatprep.subr.bf16.mxu0 %v5625_v54  ;;  %v5702_v39 = vld [vmem:[#allocation3 + $0x7e4] ss:$16 sps:$4 sm:$0xff]   ;;  %v5703_v44 = vld [vmem:[#allocation3 + $0x5c0] ss:$16 sps:$4 sm:$0xff]  }
  0x41   :  { %4058 = vmatprep.subr.bf16.mxu1 %v5627_v55  ;;  %v5705_v42 = vld [vmem:[#allocation3 + $0x5c4] ss:$16 sps:$4 sm:$0xff]   ;;  %v5706_v45 = vld [vmem:[#allocation3 + $0x7c0] ss:$16 sps:$4 sm:$0xff]  }
  0x42   :  { %v5708_v43 = vld [vmem:[#allocation3 + $0x7c4] ss:$16 sps:$4 sm:$0xff]   ;;  %v5709_v48 = vld [vmem:[#allocation3 + $0x5a0] ss:$16 sps:$4 sm:$0xff]  }
  0x43   :  { %4016 = vmatpush2.bf16.msra.mxu0 %v5629_v56  ;;  %v5711_v46 = vld [vmem:[#allocation3 + $0x5a4] ss:$16 sps:$4 sm:$0xff]   ;;  %v5712_v49 = vld [vmem:[#allocation3 + $0x7a0] ss:$16 sps:$4 sm:$0xff]  }
  0x44   :  { %4059 = vmatpush2.bf16.msra.mxu1 %v5630_v57  ;;  %4017 = vmatprep.subr.bf16.mxu0 %v5631_v58  ;;  %v5714_v47 = vld [vmem:[#allocation3 + $0x7a4] ss:$16 sps:$4 sm:$0xff]   ;;  %v5715_v52 = vld [vmem:[#allocation3 + $0x580] ss:$16 sps:$4 sm:$0xff]  }
  0x45   :  { %4060 = vmatprep.subr.bf16.mxu1 %v5633_v59  ;;  %v5717_v50 = vld [vmem:[#allocation3 + $0x584] ss:$16 sps:$4 sm:$0xff]   ;;  %v5718_v53 = vld [vmem:[#allocation3 + $0x780] ss:$16 sps:$4 sm:$0xff]  }
  0x46   :  { %v5720_v51 = vld [vmem:[#allocation3 + $0x784] ss:$16 sps:$4 sm:$0xff]   ;;  %v5721_v56 = vld [vmem:[#allocation3 + $0x560] ss:$16 sps:$4 sm:$0xff]  }
  0x47   :  { %4018 = vmatpush2.bf16.msra.mxu0 %v5635_v60  ;;  %v5723_v54 = vld [vmem:[#allocation3 + $0x564] ss:$16 sps:$4 sm:$0xff]   ;;  %v5724_v57 = vld [vmem:[#allocation3 + $0x760] ss:$16 sps:$4 sm:$0xff]  }
  0x48   :  { %4061 = vmatpush2.bf16.msra.mxu1 %v5636_v61  ;;  %4019 = vmatprep.subr.bf16.mxu0 %v5637_v62  ;;  %v5726_v55 = vld [vmem:[#allocation3 + $0x764] ss:$16 sps:$4 sm:$0xff]   ;;  %v5727_v60 = vld [vmem:[#allocation3 + $0x540] ss:$16 sps:$4 sm:$0xff]  }
  0x49   :  { %4062 = vmatprep.subr.bf16.mxu1 %v5639_v63  ;;  %v5729_v58 = vld [vmem:[#allocation3 + $0x544] ss:$16 sps:$4 sm:$0xff]   ;;  %v5730_v61 = vld [vmem:[#allocation3 + $0x740] ss:$16 sps:$4 sm:$0xff]  }
  0x4a   :  { %v5732_v59 = vld [vmem:[#allocation3 + $0x744] ss:$16 sps:$4 sm:$0xff]  }
  0x4b   :  { %4020 = vmatpush2.bf16.msra.mxu0 %v5641_v0  ;;  %v5735_v62 = vld [vmem:[#allocation3 + $0x524] ss:$16 sps:$4 sm:$0xff]   ;;  %v5733_v0 = vld [vmem:[#allocation3 + $0x520] ss:$16 sps:$4 sm:$0xff]  }
  0x4c   :  { %4063 = vmatpush2.bf16.msra.mxu1 %v5642_v1  ;;  %4075 = vmatprep.subr.bf16.mxu0 %v5651_v2  ;;  %v5738_v63 = vld [vmem:[#allocation3 + $0x724] ss:$16 sps:$4 sm:$0xff]   ;;  %v5736_v1 = vld [vmem:[#allocation3 + $0x720] ss:$16 sps:$4 sm:$0xff]  }
  0x4d   :  { %4118 = vmatprep.subr.bf16.mxu1 %v5654_v3  ;;  %v5741_v2 = vld [vmem:[#allocation3 + $0x504] ss:$16 sps:$4 sm:$0xff]  }
  0x4e   :  { %4022 = vmatmul.mubr.bf16.vlgmr.msra.gmra.mxu0 %v5643_v4  ;;  %v5744_v3 = vld [vmem:[#allocation3 + $0x704] ss:$16 sps:$4 sm:$0xff]   ;;  %v5739_v4 = vld [vmem:[#allocation3 + $0x500] ss:$16 sps:$4 sm:$0xff]  }
  0x4f   :  { %4065 = vmatmul.mubr.bf16.vlgmr.msra.gmra.mxu1 %v5646_v5  ;;  %4076 = vmatpush1.bf16.msra.mxu0 %v5649_v6  ;;  %v5742_v5 = vld [vmem:[#allocation3 + $0x700] ss:$16 sps:$4 sm:$0xff]   ;;  %v5753_v6 = vld [vmem:[#allocation3 + $0x8e4] ss:$16 sps:$4 sm:$0xff]  }
  0x50   :  { %4119 = vmatpush1.bf16.msra.mxu1 %v5652_v7  ;;  %4077 = vmatprep.subr.bf16.mxu0 %v5657_v8  ;;  %v5756_v7 = vld [vmem:[#allocation3 + $0xae4] ss:$16 sps:$4 sm:$0xff]   ;;  %v5745_v8 = vld [vmem:[%s6812_s0 + $0x10] ss:$80 sps:$4 sm:$0xff]  }
  0x51   :  { %4120 = vmatprep.subr.bf16.mxu1 %v5660_v9  ;;  %4107 = vmatprep.mubr.bf16.mxu0 %v5747_v34  ;;  %v5748_v9 = vld [vmem:[%s6812_s0 + $0x18] ss:$80 sps:$4 sm:$0xff]   ;;  %v5789_v34 = vld [vmem:[#allocation3 + $0x824] ss:$16 sps:$4 sm:$0xff]  }
  0x52   :  { %4150 = vmatprep.mubr.bf16.mxu1 %v5750_v35  ;;  %v5792_v35 = vld [vmem:[#allocation3 + $0xa24] ss:$16 sps:$4 sm:$0xff]  }
  0x53   :  { %4078 = vmatpush1.bf16.msra.mxu0 %v5655_v10  ;;  %v5751_v10 = vld [vmem:[#allocation3 + $0x8e0] ss:$16 sps:$4 sm:$0xff]  }
  0x54   :  { %4121 = vmatpush1.bf16.msra.mxu1 %v5658_v11  ;;  %4079 = vmatprep.subr.bf16.mxu0 %v5663_v12  ;;  %v5754_v11 = vld [vmem:[#allocation3 + $0xae0] ss:$16 sps:$4 sm:$0xff]   ;;  %v5759_v12 = vld [vmem:[#allocation3 + $0x8c4] ss:$16 sps:$4 sm:$0xff]  }
  0x55   :  { %4122 = vmatprep.subr.bf16.mxu1 %v5666_v13  ;;  %v5762_v13 = vld [vmem:[#allocation3 + $0xac4] ss:$16 sps:$4 sm:$0xff]  }
  0x57   :  { %4080 = vmatpush1.bf16.msra.mxu0 %v5661_v14  ;;  %v5757_v14 = vld [vmem:[#allocation3 + $0x8c0] ss:$16 sps:$4 sm:$0xff]  }
  0x58   :  { %4123 = vmatpush1.bf16.msra.mxu1 %v5664_v15  ;;  %4081 = vmatprep.subr.bf16.mxu0 %v5669_v16  ;;  %v5760_v15 = vld [vmem:[#allocation3 + $0xac0] ss:$16 sps:$4 sm:$0xff]   ;;  %v5765_v16 = vld [vmem:[#allocation3 + $0x8a4] ss:$16 sps:$4 sm:$0xff]  }
  0x59   :  { %4124 = vmatprep.subr.bf16.mxu1 %v5672_v17  ;;  %v5768_v17 = vld [vmem:[#allocation3 + $0xaa4] ss:$16 sps:$4 sm:$0xff]  }
  0x5b   :  { %4082 = vmatpush1.bf16.msra.mxu0 %v5667_v18  ;;  %v5763_v18 = vld [vmem:[#allocation3 + $0x8a0] ss:$16 sps:$4 sm:$0xff]  }
  0x5c   :  { %4125 = vmatpush1.bf16.msra.mxu1 %v5670_v19  ;;  %4083 = vmatprep.subr.bf16.mxu0 %v5675_v20  ;;  %v5849_v19 = vld [vmem:[%s6812_s0 + $0x24] ss:$80 sps:$4 sm:$0xff]   ;;  %v5766_v20 = vld [vmem:[#allocation3 + $0xaa0] ss:$16 sps:$4 sm:$0xff]  }
  0x5d   :  { %4126 = vmatprep.subr.bf16.mxu1 %v5678_v21  ;;  %v5852_v21 = vld [vmem:[%s6812_s0 + $0x2c] ss:$80 sps:$4 sm:$0xff]  }
  0x5f   :  { %4084 = vmatpush1.bf16.msra.mxu0 %v5673_v22  ;;  %v5771_v22 = vld [vmem:[#allocation3 + $0x884] ss:$16 sps:$4 sm:$0xff]  }
  0x60   :  { %4127 = vmatpush1.bf16.msra.mxu1 %v5676_v23  ;;  %4085 = vmatprep.subr.bf16.mxu0 %v5681_v24  ;;  %v5774_v23 = vld [vmem:[#allocation3 + $0xa84] ss:$16 sps:$4 sm:$0xff]   ;;  %v5769_v24 = vld [vmem:[#allocation3 + $0x880] ss:$16 sps:$4 sm:$0xff]  }
  0x61   :  { %4128 = vmatprep.subr.bf16.mxu1 %v5684_v25  ;;  %v5772_v25 = vld [vmem:[#allocation3 + $0xa80] ss:$16 sps:$4 sm:$0xff]  }
  0x63   :  { %4086 = vmatpush1.bf16.msra.mxu0 %v5679_v26  ;;  %v5777_v26 = vld [vmem:[#allocation3 + $0x864] ss:$16 sps:$4 sm:$0xff]  }
  0x64   :  { %4129 = vmatpush1.bf16.msra.mxu1 %v5682_v27  ;;  %4087 = vmatprep.subr.bf16.mxu0 %v5687_v28  ;;  %v5780_v27 = vld [vmem:[#allocation3 + $0xa64] ss:$16 sps:$4 sm:$0xff]   ;;  %v5775_v28 = vld [vmem:[#allocation3 + $0x860] ss:$16 sps:$4 sm:$0xff]  }
  0x65   :  { %4130 = vmatprep.subr.bf16.mxu1 %v5690_v29  ;;  %v5778_v29 = vld [vmem:[#allocation3 + $0xa60] ss:$16 sps:$4 sm:$0xff]  }
  0x67   :  { %4088 = vmatpush1.bf16.msra.mxu0 %v5685_v30  ;;  %v5783_v30 = vld [vmem:[#allocation3 + $0x844] ss:$16 sps:$4 sm:$0xff]  }
  0x68   :  { %4131 = vmatpush1.bf16.msra.mxu1 %v5688_v31  ;;  %4089 = vmatprep.subr.bf16.mxu0 %v5693_v32  ;;  %v5786_v31 = vld [vmem:[#allocation3 + $0xa44] ss:$16 sps:$4 sm:$0xff]   ;;  %v5781_v32 = vld [vmem:[#allocation3 + $0x840] ss:$16 sps:$4 sm:$0xff]  }
  0x69   :  { %4132 = vmatprep.subr.bf16.mxu1 %v5696_v33  ;;  %v5784_v33 = vld [vmem:[#allocation3 + $0xa40] ss:$16 sps:$4 sm:$0xff]  }
  0x6b   :  { %4090 = vmatpush1.bf16.msra.mxu0 %v5691_v36  ;;  %v5787_v36 = vld [vmem:[#allocation3 + $0x820] ss:$16 sps:$4 sm:$0xff]  }
  0x6c   :  { %4133 = vmatpush1.bf16.msra.mxu1 %v5694_v37  ;;  %4091 = vmatprep.subr.bf16.mxu0 %v5699_v38  ;;  %v5790_v37 = vld [vmem:[#allocation3 + $0xa20] ss:$16 sps:$4 sm:$0xff]   ;;  %v5795_v38 = vld [vmem:[#allocation3 + $0x804] ss:$16 sps:$4 sm:$0xff]  }
  0x6d   :  { %4134 = vmatprep.subr.bf16.mxu1 %v5702_v39  ;;  %v5798_v39 = vld [vmem:[#allocation3 + $0xa04] ss:$16 sps:$4 sm:$0xff]  }
  0x6f   :  { %4092 = vmatpush2.bf16.msra.mxu0 %v5697_v40  ;;  %v5793_v40 = vld [vmem:[#allocation3 + $0x800] ss:$16 sps:$4 sm:$0xff]  }
  0x70   :  { %4135 = vmatpush2.bf16.msra.mxu1 %v5700_v41  ;;  %4093 = vmatprep.subr.bf16.mxu0 %v5705_v42  ;;  %v5796_v41 = vld [vmem:[#allocation3 + $0xa00] ss:$16 sps:$4 sm:$0xff]   ;;  %v5801_v42 = vld [vmem:[#allocation3 + $0x9e4] ss:$16 sps:$4 sm:$0xff]  }
  0x71   :  { %4136 = vmatprep.subr.bf16.mxu1 %v5708_v43  ;;  %v5804_v43 = vld [vmem:[#allocation3 + $0xbe4] ss:$16 sps:$4 sm:$0xff]  }
  0x73   :  { %4094 = vmatpush2.bf16.msra.mxu0 %v5703_v44  ;;  %v5799_v44 = vld [vmem:[#allocation3 + $0x9e0] ss:$16 sps:$4 sm:$0xff]  }
  0x74   :  { %4137 = vmatpush2.bf16.msra.mxu1 %v5706_v45  ;;  %4095 = vmatprep.subr.bf16.mxu0 %v5711_v46  ;;  %v5802_v45 = vld [vmem:[#allocation3 + $0xbe0] ss:$16 sps:$4 sm:$0xff]   ;;  %v5807_v46 = vld [vmem:[#allocation3 + $0x9c4] ss:$16 sps:$4 sm:$0xff]  }
  0x75   :  { %4138 = vmatprep.subr.bf16.mxu1 %v5714_v47  ;;  %v5810_v47 = vld [vmem:[#allocation3 + $0xbc4] ss:$16 sps:$4 sm:$0xff]  }
  0x77   :  { %4096 = vmatpush2.bf16.msra.mxu0 %v5709_v48  ;;  %v5805_v48 = vld [vmem:[#allocation3 + $0x9c0] ss:$16 sps:$4 sm:$0xff]  }
  0x78   :  { %4139 = vmatpush2.bf16.msra.mxu1 %v5712_v49  ;;  %4097 = vmatprep.subr.bf16.mxu0 %v5717_v50  ;;  %v5808_v49 = vld [vmem:[#allocation3 + $0xbc0] ss:$16 sps:$4 sm:$0xff]   ;;  %v5813_v50 = vld [vmem:[#allocation3 + $0x9a4] ss:$16 sps:$4 sm:$0xff]  }
  0x79   :  { %4140 = vmatprep.subr.bf16.mxu1 %v5720_v51  ;;  %v5816_v51 = vld [vmem:[#allocation3 + $0xba4] ss:$16 sps:$4 sm:$0xff]  }
  0x7b   :  { %4098 = vmatpush2.bf16.msra.mxu0 %v5715_v52  ;;  %v5811_v52 = vld [vmem:[#allocation3 + $0x9a0] ss:$16 sps:$4 sm:$0xff]  }
  0x7c   :  { %4141 = vmatpush2.bf16.msra.mxu1 %v5718_v53  ;;  %4099 = vmatprep.subr.bf16.mxu0 %v5723_v54  ;;  %v5814_v53 = vld [vmem:[#allocation3 + $0xba0] ss:$16 sps:$4 sm:$0xff]   ;;  %v5819_v54 = vld [vmem:[#allocation3 + $0x984] ss:$16 sps:$4 sm:$0xff]  }
  0x7d   :  { %4142 = vmatprep.subr.bf16.mxu1 %v5726_v55  ;;  %v5822_v55 = vld [vmem:[#allocation3 + $0xb84] ss:$16 sps:$4 sm:$0xff]  }
  0x7f   :  { %4100 = vmatpush2.bf16.msra.mxu0 %v5721_v56  ;;  %v5817_v56 = vld [vmem:[#allocation3 + $0x980] ss:$16 sps:$4 sm:$0xff]  }
  0x80   :  { %4143 = vmatpush2.bf16.msra.mxu1 %v5724_v57  ;;  %4101 = vmatprep.subr.bf16.mxu0 %v5729_v58  ;;  %v5820_v57 = vld [vmem:[#allocation3 + $0xb80] ss:$16 sps:$4 sm:$0xff]   ;;  %v5825_v58 = vld [vmem:[#allocation3 + $0x964] ss:$16 sps:$4 sm:$0xff]  }
  0x81   :  { %4144 = vmatprep.subr.bf16.mxu1 %v5732_v59  ;;  %v5828_v59 = vld [vmem:[#allocation3 + $0xb64] ss:$16 sps:$4 sm:$0xff]  }
  0x83   :  { %4102 = vmatpush2.bf16.msra.mxu0 %v5727_v60  ;;  %v5823_v60 = vld [vmem:[#allocation3 + $0x960] ss:$16 sps:$4 sm:$0xff]  }
  0x84   :  { %4145 = vmatpush2.bf16.msra.mxu1 %v5730_v61  ;;  %4103 = vmatprep.subr.bf16.mxu0 %v5735_v62  ;;  %v5826_v61 = vld [vmem:[#allocation3 + $0xb60] ss:$16 sps:$4 sm:$0xff]   ;;  %v5831_v62 = vld [vmem:[#allocation3 + $0x944] ss:$16 sps:$4 sm:$0xff]  }
  0x85   :  { %4146 = vmatprep.subr.bf16.mxu1 %v5738_v63  ;;  %v5834_v63 = vld [vmem:[#allocation3 + $0xb44] ss:$16 sps:$4 sm:$0xff]  }
  0x87   :  { %4104 = vmatpush2.bf16.msra.mxu0 %v5733_v0  ;;  %v5829_v0 = vld [vmem:[#allocation3 + $0x940] ss:$16 sps:$4 sm:$0xff]  }
  0x88   :  { %4147 = vmatpush2.bf16.msra.mxu1 %v5736_v1  ;;  %4105 = vmatprep.subr.bf16.mxu0 %v5741_v2  ;;  %v5832_v1 = vld [vmem:[#allocation3 + $0xb40] ss:$16 sps:$4 sm:$0xff]   ;;  %v5837_v2 = vld [vmem:[#allocation3 + $0x924] ss:$16 sps:$4 sm:$0xff]  }
  0x89   :  { %4148 = vmatprep.subr.bf16.mxu1 %v5744_v3  ;;  %v5840_v3 = vld [vmem:[#allocation3 + $0xb24] ss:$16 sps:$4 sm:$0xff]  }
  0x8b   :  { %4106 = vmatpush2.bf16.msra.mxu0 %v5739_v4  ;;  %v5835_v4 = vld [vmem:[#allocation3 + $0x920] ss:$16 sps:$4 sm:$0xff]  }
  0x8c   :  { %4149 = vmatpush2.bf16.msra.mxu1 %v5742_v5  ;;  %4161 = vmatprep.subr.bf16.mxu0 %v5753_v6  ;;  %v5838_v5 = vld [vmem:[#allocation3 + $0xb20] ss:$16 sps:$4 sm:$0xff]   ;;  %v5843_v6 = vld [vmem:[#allocation3 + $0x904] ss:$16 sps:$4 sm:$0xff]  }
  0x8d   :  { %4204 = vmatprep.subr.bf16.mxu1 %v5756_v7  ;;  %v5846_v7 = vld [vmem:[#allocation3 + $0xb04] ss:$16 sps:$4 sm:$0xff]  }
  0x8e   :  { %4108 = vmatmul.mubr.bf16.vlgmr.msra.gmra.mxu0 %v5745_v8  ;;  %v5841_v8 = vld [vmem:[#allocation3 + $0x900] ss:$16 sps:$4 sm:$0xff]  }
  0x8f   :  { %4151 = vmatmul.mubr.bf16.vlgmr.msra.gmra.mxu1 %v5748_v9  ;;  %4162 = vmatpush1.bf16.msra.mxu0 %v5751_v10  ;;  %v5844_v9 = vld [vmem:[#allocation3 + $0xb00] ss:$16 sps:$4 sm:$0xff]   ;;  %v5855_v10 = vld [vmem:[#allocation3 + $0xce4] ss:$16 sps:$4 sm:$0xff]  }
  0x90   :  { %4205 = vmatpush1.bf16.msra.mxu1 %v5754_v11  ;;  %4163 = vmatprep.subr.bf16.mxu0 %v5759_v12  ;;  %v5858_v11 = vld [vmem:[#allocation3 + $0xee4] ss:$16 sps:$4 sm:$0xff]   ;;  %v5847_v12 = vld [vmem:[%s6812_s0 + $0x20] ss:$80 sps:$4 sm:$0xff]  }
  0x91   :  { %4206 = vmatprep.subr.bf16.mxu1 %v5762_v13  ;;  %4193 = vmatprep.mubr.bf16.mxu0 %v5849_v19  ;;  %v5850_v13 = vld [vmem:[%s6812_s0 + $0x28] ss:$80 sps:$4 sm:$0xff]   ;;  %v5954_v19 = vld [vmem:[%s6812_s0 + $0x3c] ss:$80 sps:$4 sm:$0xff]  }
  0x92   :  { %4236 = vmatprep.mubr.bf16.mxu1 %v5852_v21  ;;  %v5862_v21 = vld [vmem:[#allocation3 + $0xec0] ss:$16 sps:$4 sm:$0xff]  }
  0x93   :  { %4164 = vmatpush1.bf16.msra.mxu0 %v5757_v14  ;;  %v5853_v14 = vld [vmem:[#allocation3 + $0xce0] ss:$16 sps:$4 sm:$0xff]  }
  0x94   :  { %4207 = vmatpush1.bf16.msra.mxu1 %v5760_v15  ;;  %4165 = vmatprep.subr.bf16.mxu0 %v5765_v16  ;;  %v5856_v15 = vld [vmem:[#allocation3 + $0xee0] ss:$16 sps:$4 sm:$0xff]   ;;  %v5861_v16 = vld [vmem:[#allocation3 + $0xcc4] ss:$16 sps:$4 sm:$0xff]  }
  0x95   :  { %4208 = vmatprep.subr.bf16.mxu1 %v5768_v17  ;;  %v5864_v17 = vld [vmem:[#allocation3 + $0xec4] ss:$16 sps:$4 sm:$0xff]  }
  0x97   :  { %4166 = vmatpush1.bf16.msra.mxu0 %v5763_v18  ;;  %v5951_v18 = vld [vmem:[%s6812_s0 + $0x34] ss:$80 sps:$4 sm:$0xff]  }
  0x98   :  { %4209 = vmatpush1.bf16.msra.mxu1 %v5766_v20  ;;  %4167 = vmatprep.subr.bf16.mxu0 %v5771_v22  ;;  %v5859_v20 = vld [vmem:[#allocation3 + $0xcc0] ss:$16 sps:$4 sm:$0xff]   ;;  %v5867_v22 = vld [vmem:[#allocation3 + $0xca4] ss:$16 sps:$4 sm:$0xff]  }
  0x99   :  { %4210 = vmatprep.subr.bf16.mxu1 %v5774_v23  ;;  %v5870_v23 = vld [vmem:[#allocation3 + $0xea4] ss:$16 sps:$4 sm:$0xff]  }
  0x9b   :  { %4168 = vmatpush1.bf16.msra.mxu0 %v5769_v24  ;;  %v5865_v24 = vld [vmem:[#allocation3 + $0xca0] ss:$16 sps:$4 sm:$0xff]  }
  0x9c   :  { %4211 = vmatpush1.bf16.msra.mxu1 %v5772_v25  ;;  %4169 = vmatprep.subr.bf16.mxu0 %v5777_v26  ;;  %v5868_v25 = vld [vmem:[#allocation3 + $0xea0] ss:$16 sps:$4 sm:$0xff]   ;;  %v5873_v26 = vld [vmem:[#allocation3 + $0xc84] ss:$16 sps:$4 sm:$0xff]  }
  0x9d   :  { %4212 = vmatprep.subr.bf16.mxu1 %v5780_v27  ;;  %v5876_v27 = vld [vmem:[#allocation3 + $0xe84] ss:$16 sps:$4 sm:$0xff]  }
  0x9f   :  { %4170 = vmatpush1.bf16.msra.mxu0 %v5775_v28  ;;  %v5871_v28 = vld [vmem:[#allocation3 + $0xc80] ss:$16 sps:$4 sm:$0xff]  }
  0xa0   :  { %4213 = vmatpush1.bf16.msra.mxu1 %v5778_v29  ;;  %4171 = vmatprep.subr.bf16.mxu0 %v5783_v30  ;;  %v5874_v29 = vld [vmem:[#allocation3 + $0xe80] ss:$16 sps:$4 sm:$0xff]   ;;  %v5879_v30 = vld [vmem:[#allocation3 + $0xc64] ss:$16 sps:$4 sm:$0xff]  }
  0xa1   :  { %4214 = vmatprep.subr.bf16.mxu1 %v5786_v31  ;;  %v5882_v31 = vld [vmem:[#allocation3 + $0xe64] ss:$16 sps:$4 sm:$0xff]  }
  0xa3   :  { %4172 = vmatpush1.bf16.msra.mxu0 %v5781_v32  ;;  %v5877_v32 = vld [vmem:[#allocation3 + $0xc60] ss:$16 sps:$4 sm:$0xff]  }
  0xa4   :  { %4215 = vmatpush1.bf16.msra.mxu1 %v5784_v33  ;;  %4173 = vmatprep.subr.bf16.mxu0 %v5789_v34  ;;  %v5880_v33 = vld [vmem:[#allocation3 + $0xe60] ss:$16 sps:$4 sm:$0xff]   ;;  %v5885_v34 = vld [vmem:[#allocation3 + $0xc44] ss:$16 sps:$4 sm:$0xff]  }
  0xa5   :  { %4216 = vmatprep.subr.bf16.mxu1 %v5792_v35  ;;  %v5888_v35 = vld [vmem:[#allocation3 + $0xe44] ss:$16 sps:$4 sm:$0xff]  }
  0xa7   :  { %4174 = vmatpush1.bf16.msra.mxu0 %v5787_v36  ;;  %v5883_v36 = vld [vmem:[#allocation3 + $0xc40] ss:$16 sps:$4 sm:$0xff]  }
  0xa8   :  { %4217 = vmatpush1.bf16.msra.mxu1 %v5790_v37  ;;  %4175 = vmatprep.subr.bf16.mxu0 %v5795_v38  ;;  %v5886_v37 = vld [vmem:[#allocation3 + $0xe40] ss:$16 sps:$4 sm:$0xff]   ;;  %v5891_v38 = vld [vmem:[#allocation3 + $0xc24] ss:$16 sps:$4 sm:$0xff]  }
  0xa9   :  { %4218 = vmatprep.subr.bf16.mxu1 %v5798_v39  ;;  %v5894_v39 = vld [vmem:[#allocation3 + $0xe24] ss:$16 sps:$4 sm:$0xff]  }
  0xab   :  { %4176 = vmatpush1.bf16.msra.mxu0 %v5793_v40  ;;  %v5889_v40 = vld [vmem:[#allocation3 + $0xc20] ss:$16 sps:$4 sm:$0xff]  }
  0xac   :  { %4219 = vmatpush1.bf16.msra.mxu1 %v5796_v41  ;;  %4177 = vmatprep.subr.bf16.mxu0 %v5801_v42  ;;  %v5892_v41 = vld [vmem:[#allocation3 + $0xe20] ss:$16 sps:$4 sm:$0xff]   ;;  %v5897_v42 = vld [vmem:[#allocation3 + $0xc04] ss:$16 sps:$4 sm:$0xff]  }
  0xad   :  { %4220 = vmatprep.subr.bf16.mxu1 %v5804_v43  ;;  %v5900_v43 = vld [vmem:[#allocation3 + $0xe04] ss:$16 sps:$4 sm:$0xff]  }
  0xaf   :  { %4178 = vmatpush2.bf16.msra.mxu0 %v5799_v44  ;;  %v5895_v44 = vld [vmem:[#allocation3 + $0xc00] ss:$16 sps:$4 sm:$0xff]  }
  0xb0   :  { %4221 = vmatpush2.bf16.msra.mxu1 %v5802_v45  ;;  %4179 = vmatprep.subr.bf16.mxu0 %v5807_v46  ;;  %v5898_v45 = vld [vmem:[#allocation3 + $0xe00] ss:$16 sps:$4 sm:$0xff]   ;;  %v5903_v46 = vld [vmem:[#allocation3 + $0xde4] ss:$16 sps:$4 sm:$0xff]  }
  0xb1   :  { %4222 = vmatprep.subr.bf16.mxu1 %v5810_v47  ;;  %v5906_v47 = vld [vmem:[#allocation3 + $0xfe4] ss:$16 sps:$4 sm:$0xff]  }
  0xb3   :  { %4180 = vmatpush2.bf16.msra.mxu0 %v5805_v48  ;;  %v5901_v48 = vld [vmem:[#allocation3 + $0xde0] ss:$16 sps:$4 sm:$0xff]  }
  0xb4   :  { %4223 = vmatpush2.bf16.msra.mxu1 %v5808_v49  ;;  %4181 = vmatprep.subr.bf16.mxu0 %v5813_v50  ;;  %v5904_v49 = vld [vmem:[#allocation3 + $0xfe0] ss:$16 sps:$4 sm:$0xff]   ;;  %v5909_v50 = vld [vmem:[#allocation3 + $0xdc4] ss:$16 sps:$4 sm:$0xff]  }
  0xb5   :  { %4224 = vmatprep.subr.bf16.mxu1 %v5816_v51  ;;  %v5912_v51 = vld [vmem:[#allocation3 + $0xfc4] ss:$16 sps:$4 sm:$0xff]  }
  0xb7   :  { %4182 = vmatpush2.bf16.msra.mxu0 %v5811_v52  ;;  %v5907_v52 = vld [vmem:[#allocation3 + $0xdc0] ss:$16 sps:$4 sm:$0xff]  }
  0xb8   :  { %4225 = vmatpush2.bf16.msra.mxu1 %v5814_v53  ;;  %4183 = vmatprep.subr.bf16.mxu0 %v5819_v54  ;;  %v5910_v53 = vld [vmem:[#allocation3 + $0xfc0] ss:$16 sps:$4 sm:$0xff]   ;;  %v5915_v54 = vld [vmem:[#allocation3 + $0xda4] ss:$16 sps:$4 sm:$0xff]  }
  0xb9   :  { %4226 = vmatprep.subr.bf16.mxu1 %v5822_v55  ;;  %v5918_v55 = vld [vmem:[#allocation3 + $0xfa4] ss:$16 sps:$4 sm:$0xff]  }
  0xbb   :  { %4184 = vmatpush2.bf16.msra.mxu0 %v5817_v56  ;;  %v5913_v56 = vld [vmem:[#allocation3 + $0xda0] ss:$16 sps:$4 sm:$0xff]  }
  0xbc   :  { %4227 = vmatpush2.bf16.msra.mxu1 %v5820_v57  ;;  %4185 = vmatprep.subr.bf16.mxu0 %v5825_v58  ;;  %v5916_v57 = vld [vmem:[#allocation3 + $0xfa0] ss:$16 sps:$4 sm:$0xff]   ;;  %v5921_v58 = vld [vmem:[#allocation3 + $0xd84] ss:$16 sps:$4 sm:$0xff]  }
  0xbd   :  { %4228 = vmatprep.subr.bf16.mxu1 %v5828_v59  ;;  %v5924_v59 = vld [vmem:[#allocation3 + $0xf84] ss:$16 sps:$4 sm:$0xff]  }
  0xbf   :  { %4186 = vmatpush2.bf16.msra.mxu0 %v5823_v60  ;;  %v5919_v60 = vld [vmem:[#allocation3 + $0xd80] ss:$16 sps:$4 sm:$0xff]  }
  0xc0   :  { %4229 = vmatpush2.bf16.msra.mxu1 %v5826_v61  ;;  %4187 = vmatprep.subr.bf16.mxu0 %v5831_v62  ;;  %v5922_v61 = vld [vmem:[#allocation3 + $0xf80] ss:$16 sps:$4 sm:$0xff]   ;;  %v5927_v62 = vld [vmem:[#allocation3 + $0xd64] ss:$16 sps:$4 sm:$0xff]  }
  0xc1   :  { %4230 = vmatprep.subr.bf16.mxu1 %v5834_v63  ;;  %v5930_v63 = vld [vmem:[#allocation3 + $0xf64] ss:$16 sps:$4 sm:$0xff]  }
  0xc3   :  { %4188 = vmatpush2.bf16.msra.mxu0 %v5829_v0  ;;  %v5925_v0 = vld [vmem:[#allocation3 + $0xd60] ss:$16 sps:$4 sm:$0xff]  }
  0xc4   :  { %4231 = vmatpush2.bf16.msra.mxu1 %v5832_v1  ;;  %4189 = vmatprep.subr.bf16.mxu0 %v5837_v2  ;;  %v5928_v1 = vld [vmem:[#allocation3 + $0xf60] ss:$16 sps:$4 sm:$0xff]   ;;  %v5933_v2 = vld [vmem:[#allocation3 + $0xd44] ss:$16 sps:$4 sm:$0xff]  }
  0xc5   :  { %4232 = vmatprep.subr.bf16.mxu1 %v5840_v3  ;;  %v5936_v3 = vld [vmem:[#allocation3 + $0xf44] ss:$16 sps:$4 sm:$0xff]  }
  0xc7   :  { %4190 = vmatpush2.bf16.msra.mxu0 %v5835_v4  ;;  %v5931_v4 = vld [vmem:[#allocation3 + $0xd40] ss:$16 sps:$4 sm:$0xff]  }
  0xc8   :  { %4233 = vmatpush2.bf16.msra.mxu1 %v5838_v5  ;;  %4191 = vmatprep.subr.bf16.mxu0 %v5843_v6  ;;  %v5934_v5 = vld [vmem:[#allocation3 + $0xf40] ss:$16 sps:$4 sm:$0xff]   ;;  %v5939_v6 = vld [vmem:[#allocation3 + $0xd24] ss:$16 sps:$4 sm:$0xff]  }
  0xc9   :  { %4234 = vmatprep.subr.bf16.mxu1 %v5846_v7  ;;  %v5942_v7 = vld [vmem:[#allocation3 + $0xf24] ss:$16 sps:$4 sm:$0xff]  }
  0xcb   :  { %4192 = vmatpush2.bf16.msra.mxu0 %v5841_v8  ;;  %v5937_v8 = vld [vmem:[#allocation3 + $0xd20] ss:$16 sps:$4 sm:$0xff]  }
  0xcc   :  { %4235 = vmatpush2.bf16.msra.mxu1 %v5844_v9  ;;  %4247 = vmatprep.subr.bf16.mxu0 %v5855_v10  ;;  %v5940_v9 = vld [vmem:[#allocation3 + $0xf20] ss:$16 sps:$4 sm:$0xff]   ;;  %v5945_v10 = vld [vmem:[#allocation3 + $0xd04] ss:$16 sps:$4 sm:$0xff]  }
  0xcd   :  { %4290 = vmatprep.subr.bf16.mxu1 %v5858_v11  ;;  %v5948_v11 = vld [vmem:[#allocation3 + $0xf04] ss:$16 sps:$4 sm:$0xff]  }
  0xce   :  { %4194 = vmatmul.mubr.bf16.vlgmr.msra.gmra.mxu0 %v5847_v12  ;;  %v5943_v12 = vld [vmem:[#allocation3 + $0xd00] ss:$16 sps:$4 sm:$0xff]  }
  0xcf   :  { %4237 = vmatmul.mubr.bf16.vlgmr.msra.gmra.mxu1 %v5850_v13  ;;  %4248 = vmatpush1.bf16.msra.mxu0 %v5853_v14  ;;  %v5946_v13 = vld [vmem:[#allocation3 + $0xf00] ss:$16 sps:$4 sm:$0xff]   ;;  %v5957_v14 = vld [vmem:[#allocation3 + $0x10e4] ss:$16 sps:$4 sm:$0xff]  }
  0xd0   :  { %4291 = vmatpush1.bf16.msra.mxu1 %v5856_v15  ;;  %4249 = vmatprep.subr.bf16.mxu0 %v5861_v16  ;;  %v5960_v15 = vld [vmem:[#allocation3 + $0x12e4] ss:$16 sps:$4 sm:$0xff]   ;;  %v5949_v16 = vld [vmem:[%s6812_s0 + $0x30] ss:$80 sps:$4 sm:$0xff]  }
  0xd1   :  { %4292 = vmatprep.subr.bf16.mxu1 %v5864_v17  ;;  %4279 = vmatprep.mubr.bf16.mxu0 %v5951_v18  ;;  %v5952_v17 = vld [vmem:[%s6812_s0 + $0x38] ss:$80 sps:$4 sm:$0xff]   ;;  %v5955_v18 = vld [vmem:[#allocation3 + $0x10e0] ss:$16 sps:$4 sm:$0xff]  }
  0xd2   :  { %4322 = vmatprep.mubr.bf16.mxu1 %v5954_v19  ;;  %v5958_v19 = vld [vmem:[#allocation3 + $0x12e0] ss:$16 sps:$4 sm:$0xff]  }
  0xd3   :  { %4250 = vmatpush1.bf16.msra.mxu0 %v5859_v20  ;;  %v5963_v20 = vld [vmem:[#allocation3 + $0x10c4] ss:$16 sps:$4 sm:$0xff]  }
  0xd4   :  { %4293 = vmatpush1.bf16.msra.mxu1 %v5862_v21  ;;  %4251 = vmatprep.subr.bf16.mxu0 %v5867_v22  ;;  %v5966_v21 = vld [vmem:[#allocation3 + $0x12c4] ss:$16 sps:$4 sm:$0xff]  }
  0xd5   :  { %4294 = vmatprep.subr.bf16.mxu1 %v5870_v23  ;;  %v6053_v22 = vld [vmem:[%s6812_s0 + $0x44] ss:$80 sps:$4 sm:$0xff]   ;;  %v6056_v23 = vld [vmem:[%s6812_s0 + $0x4c] ss:$80 sps:$4 sm:$0xff]  }
  0xd7   :  { %4252 = vmatpush1.bf16.msra.mxu0 %v5865_v24  ;;  %v5961_v24 = vld [vmem:[#allocation3 + $0x10c0] ss:$16 sps:$4 sm:$0xff]  }
  0xd8   :  { %4295 = vmatpush1.bf16.msra.mxu1 %v5868_v25  ;;  %4253 = vmatprep.subr.bf16.mxu0 %v5873_v26  ;;  %v5964_v25 = vld [vmem:[#allocation3 + $0x12c0] ss:$16 sps:$4 sm:$0xff]   ;;  %v5969_v26 = vld [vmem:[#allocation3 + $0x10a4] ss:$16 sps:$4 sm:$0xff]  }
  0xd9   :  { %4296 = vmatprep.subr.bf16.mxu1 %v5876_v27  ;;  %v5972_v27 = vld [vmem:[#allocation3 + $0x12a4] ss:$16 sps:$4 sm:$0xff]  }
  0xdb   :  { %4254 = vmatpush1.bf16.msra.mxu0 %v5871_v28  ;;  %v5967_v28 = vld [vmem:[#allocation3 + $0x10a0] ss:$16 sps:$4 sm:$0xff]  }
  0xdc   :  { %4297 = vmatpush1.bf16.msra.mxu1 %v5874_v29  ;;  %4255 = vmatprep.subr.bf16.mxu0 %v5879_v30  ;;  %v5970_v29 = vld [vmem:[#allocation3 + $0x12a0] ss:$16 sps:$4 sm:$0xff]   ;;  %v5975_v30 = vld [vmem:[#allocation3 + $0x1084] ss:$16 sps:$4 sm:$0xff]  }
  0xdd   :  { %4298 = vmatprep.subr.bf16.mxu1 %v5882_v31  ;;  %v5978_v31 = vld [vmem:[#allocation3 + $0x1284] ss:$16 sps:$4 sm:$0xff]  }
  0xdf   :  { %4256 = vmatpush1.bf16.msra.mxu0 %v5877_v32  ;;  %v5973_v32 = vld [vmem:[#allocation3 + $0x1080] ss:$16 sps:$4 sm:$0xff]  }
  0xe0   :  { %4299 = vmatpush1.bf16.msra.mxu1 %v5880_v33  ;;  %4257 = vmatprep.subr.bf16.mxu0 %v5885_v34  ;;  %v5976_v33 = vld [vmem:[#allocation3 + $0x1280] ss:$16 sps:$4 sm:$0xff]   ;;  %v5981_v34 = vld [vmem:[#allocation3 + $0x1064] ss:$16 sps:$4 sm:$0xff]  }
  0xe1   :  { %4300 = vmatprep.subr.bf16.mxu1 %v5888_v35  ;;  %v5984_v35 = vld [vmem:[#allocation3 + $0x1264] ss:$16 sps:$4 sm:$0xff]  }
  0xe3   :  { %4258 = vmatpush1.bf16.msra.mxu0 %v5883_v36  ;;  %v5979_v36 = vld [vmem:[#allocation3 + $0x1060] ss:$16 sps:$4 sm:$0xff]  }
  0xe4   :  { %4301 = vmatpush1.bf16.msra.mxu1 %v5886_v37  ;;  %4259 = vmatprep.subr.bf16.mxu0 %v5891_v38  ;;  %v5982_v37 = vld [vmem:[#allocation3 + $0x1260] ss:$16 sps:$4 sm:$0xff]   ;;  %v5987_v38 = vld [vmem:[#allocation3 + $0x1044] ss:$16 sps:$4 sm:$0xff]  }
  0xe5   :  { %4302 = vmatprep.subr.bf16.mxu1 %v5894_v39  ;;  %v5990_v39 = vld [vmem:[#allocation3 + $0x1244] ss:$16 sps:$4 sm:$0xff]  }
  0xe7   :  { %4260 = vmatpush1.bf16.msra.mxu0 %v5889_v40  ;;  %v5985_v40 = vld [vmem:[#allocation3 + $0x1040] ss:$16 sps:$4 sm:$0xff]  }
  0xe8   :  { %4303 = vmatpush1.bf16.msra.mxu1 %v5892_v41  ;;  %4261 = vmatprep.subr.bf16.mxu0 %v5897_v42  ;;  %v5988_v41 = vld [vmem:[#allocation3 + $0x1240] ss:$16 sps:$4 sm:$0xff]   ;;  %v5993_v42 = vld [vmem:[#allocation3 + $0x1024] ss:$16 sps:$4 sm:$0xff]  }
  0xe9   :  { %4304 = vmatprep.subr.bf16.mxu1 %v5900_v43  ;;  %v5996_v43 = vld [vmem:[#allocation3 + $0x1224] ss:$16 sps:$4 sm:$0xff]  }
  0xeb   :  { %4262 = vmatpush1.bf16.msra.mxu0 %v5895_v44  ;;  %v5991_v44 = vld [vmem:[#allocation3 + $0x1020] ss:$16 sps:$4 sm:$0xff]  }
  0xec   :  { %4305 = vmatpush1.bf16.msra.mxu1 %v5898_v45  ;;  %4263 = vmatprep.subr.bf16.mxu0 %v5903_v46  ;;  %v5994_v45 = vld [vmem:[#allocation3 + $0x1220] ss:$16 sps:$4 sm:$0xff]   ;;  %v5999_v46 = vld [vmem:[#allocation3 + $0x1004] ss:$16 sps:$4 sm:$0xff]  }
  0xed   :  { %4306 = vmatprep.subr.bf16.mxu1 %v5906_v47  ;;  %v6002_v47 = vld [vmem:[#allocation3 + $0x1204] ss:$16 sps:$4 sm:$0xff]  }
  0xef   :  { %4264 = vmatpush2.bf16.msra.mxu0 %v5901_v48  ;;  %v5997_v48 = vld [vmem:[#allocation3 + $0x1000] ss:$16 sps:$4 sm:$0xff]  }
  0xf0   :  { %4307 = vmatpush2.bf16.msra.mxu1 %v5904_v49  ;;  %4265 = vmatprep.subr.bf16.mxu0 %v5909_v50  ;;  %v6000_v49 = vld [vmem:[#allocation3 + $0x1200] ss:$16 sps:$4 sm:$0xff]   ;;  %v6005_v50 = vld [vmem:[#allocation3 + $0x11e4] ss:$16 sps:$4 sm:$0xff]  }
  0xf1   :  { %4308 = vmatprep.subr.bf16.mxu1 %v5912_v51  ;;  %v6008_v51 = vld [vmem:[#allocation3 + $0x13e4] ss:$16 sps:$4 sm:$0xff]  }
  0xf3   :  { %4266 = vmatpush2.bf16.msra.mxu0 %v5907_v52  ;;  %v6003_v52 = vld [vmem:[#allocation3 + $0x11e0] ss:$16 sps:$4 sm:$0xff]  }
  0xf4   :  { %4309 = vmatpush2.bf16.msra.mxu1 %v5910_v53  ;;  %4267 = vmatprep.subr.bf16.mxu0 %v5915_v54  ;;  %v6006_v53 = vld [vmem:[#allocation3 + $0x13e0] ss:$16 sps:$4 sm:$0xff]   ;;  %v6011_v54 = vld [vmem:[#allocation3 + $0x11c4] ss:$16 sps:$4 sm:$0xff]  }
  0xf5   :  { %4310 = vmatprep.subr.bf16.mxu1 %v5918_v55  ;;  %v6014_v55 = vld [vmem:[#allocation3 + $0x13c4] ss:$16 sps:$4 sm:$0xff]  }
  0xf7   :  { %4268 = vmatpush2.bf16.msra.mxu0 %v5913_v56  ;;  %v6009_v56 = vld [vmem:[#allocation3 + $0x11c0] ss:$16 sps:$4 sm:$0xff]  }
  0xf8   :  { %4311 = vmatpush2.bf16.msra.mxu1 %v5916_v57  ;;  %4269 = vmatprep.subr.bf16.mxu0 %v5921_v58  ;;  %v6012_v57 = vld [vmem:[#allocation3 + $0x13c0] ss:$16 sps:$4 sm:$0xff]   ;;  %v6017_v58 = vld [vmem:[#allocation3 + $0x11a4] ss:$16 sps:$4 sm:$0xff]  }
  0xf9   :  { %4312 = vmatprep.subr.bf16.mxu1 %v5924_v59  ;;  %v6020_v59 = vld [vmem:[#allocation3 + $0x13a4] ss:$16 sps:$4 sm:$0xff]  }
  0xfb   :  { %4270 = vmatpush2.bf16.msra.mxu0 %v5919_v60  ;;  %v6015_v60 = vld [vmem:[#allocation3 + $0x11a0] ss:$16 sps:$4 sm:$0xff]  }
  0xfc   :  { %4313 = vmatpush2.bf16.msra.mxu1 %v5922_v61  ;;  %4271 = vmatprep.subr.bf16.mxu0 %v5927_v62  ;;  %v6018_v61 = vld [vmem:[#allocation3 + $0x13a0] ss:$16 sps:$4 sm:$0xff]   ;;  %v6023_v62 = vld [vmem:[#allocation3 + $0x1184] ss:$16 sps:$4 sm:$0xff]  }
  0xfd   :  { %4314 = vmatprep.subr.bf16.mxu1 %v5930_v63  ;;  %v6026_v63 = vld [vmem:[#allocation3 + $0x1384] ss:$16 sps:$4 sm:$0xff]  }
  0xff   :  { %4272 = vmatpush2.bf16.msra.mxu0 %v5925_v0  ;;  %v6021_v0 = vld [vmem:[#allocation3 + $0x1180] ss:$16 sps:$4 sm:$0xff]  }
 0x100   :  { %4315 = vmatpush2.bf16.msra.mxu1 %v5928_v1  ;;  %4273 = vmatprep.subr.bf16.mxu0 %v5933_v2  ;;  %v6024_v1 = vld [vmem:[#allocation3 + $0x1380] ss:$16 sps:$4 sm:$0xff]   ;;  %v6029_v2 = vld [vmem:[#allocation3 + $0x1164] ss:$16 sps:$4 sm:$0xff]  }
 0x101   :  { %4316 = vmatprep.subr.bf16.mxu1 %v5936_v3  ;;  %v6032_v3 = vld [vmem:[#allocation3 + $0x1364] ss:$16 sps:$4 sm:$0xff]  }
 0x103   :  { %4274 = vmatpush2.bf16.msra.mxu0 %v5931_v4  ;;  %v6027_v4 = vld [vmem:[#allocation3 + $0x1160] ss:$16 sps:$4 sm:$0xff]  }
 0x104   :  { %4317 = vmatpush2.bf16.msra.mxu1 %v5934_v5  ;;  %4275 = vmatprep.subr.bf16.mxu0 %v5939_v6  ;;  %v6030_v5 = vld [vmem:[#allocation3 + $0x1360] ss:$16 sps:$4 sm:$0xff]   ;;  %v6035_v6 = vld [vmem:[#allocation3 + $0x1144] ss:$16 sps:$4 sm:$0xff]  }
 0x105   :  { %4318 = vmatprep.subr.bf16.mxu1 %v5942_v7  ;;  %v6038_v7 = vld [vmem:[#allocation3 + $0x1344] ss:$16 sps:$4 sm:$0xff]  }
 0x107   :  { %4276 = vmatpush2.bf16.msra.mxu0 %v5937_v8  ;;  %v6033_v8 = vld [vmem:[#allocation3 + $0x1140] ss:$16 sps:$4 sm:$0xff]  }
 0x108   :  { %4319 = vmatpush2.bf16.msra.mxu1 %v5940_v9  ;;  %4277 = vmatprep.subr.bf16.mxu0 %v5945_v10  ;;  %v6036_v9 = vld [vmem:[#allocation3 + $0x1340] ss:$16 sps:$4 sm:$0xff]   ;;  %v6041_v10 = vld [vmem:[#allocation3 + $0x1124] ss:$16 sps:$4 sm:$0xff]  }
 0x109   :  { %4320 = vmatprep.subr.bf16.mxu1 %v5948_v11  ;;  %v6044_v11 = vld [vmem:[#allocation3 + $0x1324] ss:$16 sps:$4 sm:$0xff]  }
 0x10b   :  { %4278 = vmatpush2.bf16.msra.mxu0 %v5943_v12  ;;  %v6039_v12 = vld [vmem:[#allocation3 + $0x1120] ss:$16 sps:$4 sm:$0xff]  }
 0x10c   :  { %4321 = vmatpush2.bf16.msra.mxu1 %v5946_v13  ;;  %4333 = vmatprep.subr.bf16.mxu0 %v5957_v14  ;;  %v6042_v13 = vld [vmem:[#allocation3 + $0x1320] ss:$16 sps:$4 sm:$0xff]   ;;  %v6047_v14 = vld [vmem:[#allocation3 + $0x1104] ss:$16 sps:$4 sm:$0xff]  }
 0x10d   :  { %4376 = vmatprep.subr.bf16.mxu1 %v5960_v15  ;;  %v6050_v15 = vld [vmem:[#allocation3 + $0x1304] ss:$16 sps:$4 sm:$0xff]  }
 0x10e   :  { %4280 = vmatmul.mubr.bf16.vlgmr.msra.gmra.mxu0 %v5949_v16  ;;  %v6045_v16 = vld [vmem:[#allocation3 + $0x1100] ss:$16 sps:$4 sm:$0xff]  }
 0x10f   :  { %4323 = vmatmul.mubr.bf16.vlgmr.msra.gmra.mxu1 %v5952_v17  ;;  %4334 = vmatpush1.bf16.msra.mxu0 %v5955_v18  ;;  %v6048_v17 = vld [vmem:[#allocation3 + $0x1300] ss:$16 sps:$4 sm:$0xff]  }
 0x110   :  { %4377 = vmatpush1.bf16.msra.mxu1 %v5958_v19  ;;  %4335 = vmatprep.subr.bf16.mxu0 %v5963_v20  ;;  %v6051_v18 = vld [vmem:[%s6812_s0 + $0x40] ss:$80 sps:$4 sm:$0xff]   ;;  %v6054_v19 = vld [vmem:[%s6812_s0 + $0x48] ss:$80 sps:$4 sm:$0xff]   ;;  %v6059_v20 = vld [vmem:[#allocation3 + $0xec] ss:$16 sps:$4 sm:$0xff]  }
 0x111   :  { %4378 = vmatprep.subr.bf16.mxu1 %v5966_v21  ;;  %4365 = vmatprep.mubr.bf16.mxu0 %v6053_v22  ;;  %v6062_v21 = vld [vmem:[#allocation3 + $0x2ec] ss:$16 sps:$4 sm:$0xff]   ;;  %v6057_v22 = vld [vmem:[#allocation3 + $0xe8] ss:$16 sps:$4 sm:$0xff]  }
 0x112   :  { %4408 = vmatprep.mubr.bf16.mxu1 %v6056_v23  ;;  %v6060_v23 = vld [vmem:[#allocation3 + $0x2e8] ss:$16 sps:$4 sm:$0xff]  }
 0x113   :  { %4336 = vmatpush1.bf16.msra.mxu0 %v5961_v24  ;;  %v6065_v24 = vld [vmem:[#allocation3 + $0xcc] ss:$16 sps:$4 sm:$0xff]  }
 0x114   :  { %4379 = vmatpush1.bf16.msra.mxu1 %v5964_v25  ;;  %4337 = vmatprep.subr.bf16.mxu0 %v5969_v26  ;;  %v6068_v25 = vld [vmem:[#allocation3 + $0x2cc] ss:$16 sps:$4 sm:$0xff]   ;;  %v6063_v26 = vld [vmem:[#allocation3 + $0xc8] ss:$16 sps:$4 sm:$0xff]  }
 0x115   :  { %4380 = vmatprep.subr.bf16.mxu1 %v5972_v27  ;;  %v6066_v27 = vld [vmem:[#allocation3 + $0x2c8] ss:$16 sps:$4 sm:$0xff]  }
 0x117   :  { %4338 = vmatpush1.bf16.msra.mxu0 %v5967_v28  ;;  %v6071_v28 = vld [vmem:[#allocation3 + $0xac] ss:$16 sps:$4 sm:$0xff]  }
 0x118   :  { %4381 = vmatpush1.bf16.msra.mxu1 %v5970_v29  ;;  %4339 = vmatprep.subr.bf16.mxu0 %v5975_v30  ;;  %v6074_v29 = vld [vmem:[#allocation3 + $0x2ac] ss:$16 sps:$4 sm:$0xff]   ;;  %v6069_v30 = vld [vmem:[#allocation3 + $0xa8] ss:$16 sps:$4 sm:$0xff]  }
 0x119   :  { %4382 = vmatprep.subr.bf16.mxu1 %v5978_v31  ;;  %v6072_v31 = vld [vmem:[#allocation3 + $0x2a8] ss:$16 sps:$4 sm:$0xff]  }
 0x11b   :  { %4340 = vmatpush1.bf16.msra.mxu0 %v5973_v32  ;;  %v6537_v32 = vld [vmem:[%s6812_s0 + $0x4] ss:$80 sps:$4 sm:$0xff]  }
 0x11c   :  { %4383 = vmatpush1.bf16.msra.mxu1 %v5976_v33  ;;  %4341 = vmatprep.subr.bf16.mxu0 %v5981_v34  ;;  %v6538_v33 = vld [vmem:[%s6812_s0 + $0xc] ss:$80 sps:$4 sm:$0xff]  }
 0x11d   :  { %4384 = vmatprep.subr.bf16.mxu1 %v5984_v35  ;;  %v6077_v34 = vld [vmem:[#allocation3 + $0x8c] ss:$16 sps:$4 sm:$0xff]  }
 0x11e   :  { %v6080_v35 = vld [vmem:[#allocation3 + $0x28c] ss:$16 sps:$4 sm:$0xff]  }
 0x11f   :  { %4342 = vmatpush1.bf16.msra.mxu0 %v5979_v36  ;;  %v6075_v36 = vld [vmem:[#allocation3 + $0x88] ss:$16 sps:$4 sm:$0xff]  }
 0x120   :  { %4385 = vmatpush1.bf16.msra.mxu1 %v5982_v37  ;;  %4343 = vmatprep.subr.bf16.mxu0 %v5987_v38  ;;  %v6078_v37 = vld [vmem:[#allocation3 + $0x288] ss:$16 sps:$4 sm:$0xff]   ;;  %v6083_v38 = vld [vmem:[#allocation3 + $0x6c] ss:$16 sps:$4 sm:$0xff]  }
 0x121   :  { %4386 = vmatprep.subr.bf16.mxu1 %v5990_v39  ;;  %v6086_v39 = vld [vmem:[#allocation3 + $0x26c] ss:$16 sps:$4 sm:$0xff]  }
 0x123   :  { %4344 = vmatpush1.bf16.msra.mxu0 %v5985_v40  ;;  %v6081_v40 = vld [vmem:[#allocation3 + $0x68] ss:$16 sps:$4 sm:$0xff]  }
 0x124   :  { %4387 = vmatpush1.bf16.msra.mxu1 %v5988_v41  ;;  %4345 = vmatprep.subr.bf16.mxu0 %v5993_v42  ;;  %v6084_v41 = vld [vmem:[#allocation3 + $0x268] ss:$16 sps:$4 sm:$0xff]   ;;  %v6089_v42 = vld [vmem:[#allocation3 + $0x4c] ss:$16 sps:$4 sm:$0xff]  }
 0x125   :  { %4388 = vmatprep.subr.bf16.mxu1 %v5996_v43  ;;  %v6092_v43 = vld [vmem:[#allocation3 + $0x24c] ss:$16 sps:$4 sm:$0xff]  }
 0x127   :  { %4346 = vmatpush1.bf16.msra.mxu0 %v5991_v44  ;;  %v6087_v44 = vld [vmem:[#allocation3 + $0x48] ss:$16 sps:$4 sm:$0xff]  }
 0x128   :  { %4389 = vmatpush1.bf16.msra.mxu1 %v5994_v45  ;;  %4347 = vmatprep.subr.bf16.mxu0 %v5999_v46  ;;  %v6090_v45 = vld [vmem:[#allocation3 + $0x248] ss:$16 sps:$4 sm:$0xff]   ;;  %v6095_v46 = vld [vmem:[#allocation3 + $0x2c] ss:$16 sps:$4 sm:$0xff]  }
 0x129   :  { %4390 = vmatprep.subr.bf16.mxu1 %v6002_v47  ;;  %v6098_v47 = vld [vmem:[#allocation3 + $0x22c] ss:$16 sps:$4 sm:$0xff]  }
 0x12b   :  { %4348 = vmatpush1.bf16.msra.mxu0 %v5997_v48  ;;  %v6093_v48 = vld [vmem:[#allocation3 + $0x28] ss:$16 sps:$4 sm:$0xff]  }
 0x12c   :  { %4391 = vmatpush1.bf16.msra.mxu1 %v6000_v49  ;;  %4349 = vmatprep.subr.bf16.mxu0 %v6005_v50  ;;  %v6096_v49 = vld [vmem:[#allocation3 + $0x228] ss:$16 sps:$4 sm:$0xff]   ;;  %v6101_v50 = vld [vmem:[#allocation3 + $0xc] ss:$16 sps:$4 sm:$0xff]  }
 0x12d   :  { %4392 = vmatprep.subr.bf16.mxu1 %v6008_v51  ;;  %v6104_v51 = vld [vmem:[#allocation3 + $0x20c] ss:$16 sps:$4 sm:$0xff]  }
 0x12f   :  { %4350 = vmatpush2.bf16.msra.mxu0 %v6003_v52  ;;  %v6099_v52 = vld [vmem:[#allocation3 + $0x8] ss:$16 sps:$4 sm:$0xff]  }
 0x130   :  { %4393 = vmatpush2.bf16.msra.mxu1 %v6006_v53  ;;  %4351 = vmatprep.subr.bf16.mxu0 %v6011_v54  ;;  %v6102_v53 = vld [vmem:[#allocation3 + $0x208] ss:$16 sps:$4 sm:$0xff]   ;;  %v6107_v54 = vld [vmem:[#allocation3 + $0x1ec] ss:$16 sps:$4 sm:$0xff]  }
 0x131   :  { %4394 = vmatprep.subr.bf16.mxu1 %v6014_v55  ;;  %v6110_v55 = vld [vmem:[#allocation3 + $0x3ec] ss:$16 sps:$4 sm:$0xff]  }
 0x133   :  { %4352 = vmatpush2.bf16.msra.mxu0 %v6009_v56  ;;  %v6105_v56 = vld [vmem:[#allocation3 + $0x1e8] ss:$16 sps:$4 sm:$0xff]  }
 0x134   :  { %4395 = vmatpush2.bf16.msra.mxu1 %v6012_v57  ;;  %4353 = vmatprep.subr.bf16.mxu0 %v6017_v58  ;;  %v6108_v57 = vld [vmem:[#allocation3 + $0x3e8] ss:$16 sps:$4 sm:$0xff]   ;;  %v6113_v58 = vld [vmem:[#allocation3 + $0x1cc] ss:$16 sps:$4 sm:$0xff]  }
 0x135   :  { %4396 = vmatprep.subr.bf16.mxu1 %v6020_v59  ;;  %v6116_v59 = vld [vmem:[#allocation3 + $0x3cc] ss:$16 sps:$4 sm:$0xff]  }
 0x137   :  { %4354 = vmatpush2.bf16.msra.mxu0 %v6015_v60  ;;  %v6111_v60 = vld [vmem:[#allocation3 + $0x1c8] ss:$16 sps:$4 sm:$0xff]  }
 0x138   :  { %4397 = vmatpush2.bf16.msra.mxu1 %v6018_v61  ;;  %4355 = vmatprep.subr.bf16.mxu0 %v6023_v62  ;;  %v6114_v61 = vld [vmem:[#allocation3 + $0x3c8] ss:$16 sps:$4 sm:$0xff]   ;;  %v6119_v62 = vld [vmem:[#allocation3 + $0x1ac] ss:$16 sps:$4 sm:$0xff]  }
 0x139   :  { %4398 = vmatprep.subr.bf16.mxu1 %v6026_v63  ;;  %v6122_v63 = vld [vmem:[#allocation3 + $0x3ac] ss:$16 sps:$4 sm:$0xff]  }
 0x13b   :  { %4356 = vmatpush2.bf16.msra.mxu0 %v6021_v0  ;;  %v6117_v0 = vld [vmem:[#allocation3 + $0x1a8] ss:$16 sps:$4 sm:$0xff]  }
 0x13c   :  { %4399 = vmatpush2.bf16.msra.mxu1 %v6024_v1  ;;  %4357 = vmatprep.subr.bf16.mxu0 %v6029_v2  ;;  %v6120_v1 = vld [vmem:[#allocation3 + $0x3a8] ss:$16 sps:$4 sm:$0xff]   ;;  %v6125_v2 = vld [vmem:[#allocation3 + $0x18c] ss:$16 sps:$4 sm:$0xff]  }
 0x13d   :  { %4400 = vmatprep.subr.bf16.mxu1 %v6032_v3  ;;  %v6128_v3 = vld [vmem:[#allocation3 + $0x38c] ss:$16 sps:$4 sm:$0xff]  }
 0x13f   :  { %4358 = vmatpush2.bf16.msra.mxu0 %v6027_v4  ;;  %v6123_v4 = vld [vmem:[#allocation3 + $0x188] ss:$16 sps:$4 sm:$0xff]  }
 0x140   :  { %4401 = vmatpush2.bf16.msra.mxu1 %v6030_v5  ;;  %4359 = vmatprep.subr.bf16.mxu0 %v6035_v6  ;;  %v6126_v5 = vld [vmem:[#allocation3 + $0x388] ss:$16 sps:$4 sm:$0xff]   ;;  %v6131_v6 = vld [vmem:[#allocation3 + $0x16c] ss:$16 sps:$4 sm:$0xff]  }
 0x141   :  { %4402 = vmatprep.subr.bf16.mxu1 %v6038_v7  ;;  %v6134_v7 = vld [vmem:[#allocation3 + $0x36c] ss:$16 sps:$4 sm:$0xff]  }
 0x143   :  { %4360 = vmatpush2.bf16.msra.mxu0 %v6033_v8  ;;  %v6129_v8 = vld [vmem:[#allocation3 + $0x168] ss:$16 sps:$4 sm:$0xff]  }
 0x144   :  { %4403 = vmatpush2.bf16.msra.mxu1 %v6036_v9  ;;  %4361 = vmatprep.subr.bf16.mxu0 %v6041_v10  ;;  %v6132_v9 = vld [vmem:[#allocation3 + $0x368] ss:$16 sps:$4 sm:$0xff]   ;;  %v6137_v10 = vld [vmem:[#allocation3 + $0x14c] ss:$16 sps:$4 sm:$0xff]  }
 0x145   :  { %4404 = vmatprep.subr.bf16.mxu1 %v6044_v11  ;;  %v6140_v11 = vld [vmem:[#allocation3 + $0x34c] ss:$16 sps:$4 sm:$0xff]  }
 0x147   :  { %4362 = vmatpush2.bf16.msra.mxu0 %v6039_v12  ;;  %v6135_v12 = vld [vmem:[#allocation3 + $0x148] ss:$16 sps:$4 sm:$0xff]  }
 0x148   :  { %4405 = vmatpush2.bf16.msra.mxu1 %v6042_v13  ;;  %4363 = vmatprep.subr.bf16.mxu0 %v6047_v14  ;;  %v6138_v13 = vld [vmem:[#allocation3 + $0x348] ss:$16 sps:$4 sm:$0xff]   ;;  %v6143_v14 = vld [vmem:[#allocation3 + $0x12c] ss:$16 sps:$4 sm:$0xff]  }
 0x149   :  { %4406 = vmatprep.subr.bf16.mxu1 %v6050_v15  ;;  %v6146_v15 = vld [vmem:[#allocation3 + $0x32c] ss:$16 sps:$4 sm:$0xff]  }
 0x14b   :  { %4364 = vmatpush2.bf16.msra.mxu0 %v6045_v16  ;;  %v6141_v16 = vld [vmem:[#allocation3 + $0x128] ss:$16 sps:$4 sm:$0xff]  }
 0x14c   :  { %4407 = vmatpush2.bf16.msra.mxu1 %v6048_v17  ;;  %4419 = vmatprep.subr.bf16.mxu0 %v6059_v20  ;;  %v6144_v17 = vld [vmem:[#allocation3 + $0x328] ss:$16 sps:$4 sm:$0xff]  }
 0x14d   :  { %4462 = vmatprep.subr.bf16.mxu1 %v6062_v21  ;;  %v6147_v20 = vld [vmem:[#allocation3 + $0x108] ss:$16 sps:$4 sm:$0xff]  }
 0x14e   :  { %4366 = vmatmul.mubr.bf16.vlgmr.msra.gmra.mxu0 %v6051_v18  ;;  %v6149_v18 = vld [vmem:[#allocation3 + $0x10c] ss:$16 sps:$4 sm:$0xff]   ;;  %v6150_v21 = vld [vmem:[#allocation3 + $0x308] ss:$16 sps:$4 sm:$0xff]  }
 0x14f   :  { %4409 = vmatmul.mubr.bf16.vlgmr.msra.gmra.mxu1 %v6054_v19  ;;  %4420 = vmatpush1.bf16.msra.mxu0 %v6057_v22  ;;  %v6152_v19 = vld [vmem:[#allocation3 + $0x30c] ss:$16 sps:$4 sm:$0xff]  }
 0x150   :  { %4463 = vmatpush1.bf16.msra.mxu1 %v6060_v23  ;;  %4421 = vmatprep.subr.bf16.mxu0 %v6065_v24  ;;  %v6155_v22 = vld [vmem:[#allocation3 + $0x4ec] ss:$16 sps:$4 sm:$0xff]   ;;  %v6153_v24 = vld [vmem:[#allocation3 + $0x4e8] ss:$16 sps:$4 sm:$0xff]  }
 0x151   :  { %4464 = vmatprep.subr.bf16.mxu1 %v6068_v25  ;;  %4451 = vmatprep.mubr.bf16.mxu0 %v6537_v32  ;;  %v6158_v23 = vld [vmem:[#allocation3 + $0x6ec] ss:$16 sps:$4 sm:$0xff]   ;;  %v6156_v25 = vld [vmem:[#allocation3 + $0x6e8] ss:$16 sps:$4 sm:$0xff]  }
 0x152   :  { %4494 = vmatprep.mubr.bf16.mxu1 %v6538_v33  ;;  %v6167_v32 = vld [vmem:[#allocation3 + $0x4ac] ss:$16 sps:$4 sm:$0xff]  }
 0x153   :  { %4422 = vmatpush1.bf16.msra.mxu0 %v6063_v26  ;;  %v6161_v26 = vld [vmem:[#allocation3 + $0x4cc] ss:$16 sps:$4 sm:$0xff]  }
 0x154   :  { %4465 = vmatpush1.bf16.msra.mxu1 %v6066_v27  ;;  %4423 = vmatprep.subr.bf16.mxu0 %v6071_v28  ;;  %v6164_v27 = vld [vmem:[#allocation3 + $0x6cc] ss:$16 sps:$4 sm:$0xff]   ;;  %v6159_v28 = vld [vmem:[#allocation3 + $0x4c8] ss:$16 sps:$4 sm:$0xff]  }
 0x155   :  { %4466 = vmatprep.subr.bf16.mxu1 %v6074_v29  ;;  %v6162_v29 = vld [vmem:[#allocation3 + $0x6c8] ss:$16 sps:$4 sm:$0xff]   ;;  %v6170_v33 = vld [vmem:[#allocation3 + $0x6ac] ss:$16 sps:$4 sm:$0xff]  }
 0x157   :  { %4424 = vmatpush1.bf16.msra.mxu0 %v6069_v30  ;;  %v6539_v30 = vld [vmem:[%s6812_s0] ss:$80 sps:$4 sm:$0xff]  }
 0x158   :  { %4467 = vmatpush1.bf16.msra.mxu1 %v6072_v31  ;;  %4425 = vmatprep.subr.bf16.mxu0 %v6077_v34  ;;  %v6540_v31 = vld [vmem:[%s6812_s0 + $0x8] ss:$80 sps:$4 sm:$0xff]  }
 0x159   :  { %4468 = vmatprep.subr.bf16.mxu1 %v6080_v35  ;;  %v6165_v34 = vld [vmem:[#allocation3 + $0x4a8] ss:$16 sps:$4 sm:$0xff]  }
 0x15a   :  { %v6168_v35 = vld [vmem:[#allocation3 + $0x6a8] ss:$16 sps:$4 sm:$0xff]  }
 0x15b   :  { %4426 = vmatpush1.bf16.msra.mxu0 %v6075_v36  ;;  %v6541_v36 = vld [vmem:[%s6812_s0 + $0x14] ss:$80 sps:$4 sm:$0xff]  }
 0x15c   :  { %4469 = vmatpush1.bf16.msra.mxu1 %v6078_v37  ;;  %4427 = vmatprep.subr.bf16.mxu0 %v6083_v38  ;;  %v6542_v37 = vld [vmem:[%s6812_s0 + $0x1c] ss:$80 sps:$4 sm:$0xff]  }
 0x15d   :  { %4470 = vmatprep.subr.bf16.mxu1 %v6086_v39  ;;  %v6173_v38 = vld [vmem:[#allocation3 + $0x48c] ss:$16 sps:$4 sm:$0xff]  }
 0x15e   :  { %v6176_v39 = vld [vmem:[#allocation3 + $0x68c] ss:$16 sps:$4 sm:$0xff]  }
 0x15f   :  { %4428 = vmatpush1.bf16.msra.mxu0 %v6081_v40  ;;  %v6171_v40 = vld [vmem:[#allocation3 + $0x488] ss:$16 sps:$4 sm:$0xff]  }
 0x160   :  { %4471 = vmatpush1.bf16.msra.mxu1 %v6084_v41  ;;  %4429 = vmatprep.subr.bf16.mxu0 %v6089_v42  ;;  %v6174_v41 = vld [vmem:[#allocation3 + $0x688] ss:$16 sps:$4 sm:$0xff]   ;;  %v6179_v42 = vld [vmem:[#allocation3 + $0x46c] ss:$16 sps:$4 sm:$0xff]  }
 0x161   :  { %4472 = vmatprep.subr.bf16.mxu1 %v6092_v43  ;;  %v6182_v43 = vld [vmem:[#allocation3 + $0x66c] ss:$16 sps:$4 sm:$0xff]  }
 0x163   :  { %4430 = vmatpush1.bf16.msra.mxu0 %v6087_v44  ;;  %v6177_v44 = vld [vmem:[#allocation3 + $0x468] ss:$16 sps:$4 sm:$0xff]  }
 0x164   :  { %4473 = vmatpush1.bf16.msra.mxu1 %v6090_v45  ;;  %4431 = vmatprep.subr.bf16.mxu0 %v6095_v46  ;;  %v6180_v45 = vld [vmem:[#allocation3 + $0x668] ss:$16 sps:$4 sm:$0xff]   ;;  %v6185_v46 = vld [vmem:[#allocation3 + $0x44c] ss:$16 sps:$4 sm:$0xff]  }
 0x165   :  { %4474 = vmatprep.subr.bf16.mxu1 %v6098_v47  ;;  %v6188_v47 = vld [vmem:[#allocation3 + $0x64c] ss:$16 sps:$4 sm:$0xff]  }
 0x167   :  { %4432 = vmatpush1.bf16.msra.mxu0 %v6093_v48  ;;  %v6183_v48 = vld [vmem:[#allocation3 + $0x448] ss:$16 sps:$4 sm:$0xff]  }
 0x168   :  { %4475 = vmatpush1.bf16.msra.mxu1 %v6096_v49  ;;  %4433 = vmatprep.subr.bf16.mxu0 %v6101_v50  ;;  %v6186_v49 = vld [vmem:[#allocation3 + $0x648] ss:$16 sps:$4 sm:$0xff]   ;;  %v6191_v50 = vld [vmem:[#allocation3 + $0x42c] ss:$16 sps:$4 sm:$0xff]  }
 0x169   :  { %4476 = vmatprep.subr.bf16.mxu1 %v6104_v51  ;;  %v6194_v51 = vld [vmem:[#allocation3 + $0x62c] ss:$16 sps:$4 sm:$0xff]  }
 0x16b   :  { %4434 = vmatpush1.bf16.msra.mxu0 %v6099_v52  ;;  %v6189_v52 = vld [vmem:[#allocation3 + $0x428] ss:$16 sps:$4 sm:$0xff]  }
 0x16c   :  { %4477 = vmatpush1.bf16.msra.mxu1 %v6102_v53  ;;  %4435 = vmatprep.subr.bf16.mxu0 %v6107_v54  ;;  %v6192_v53 = vld [vmem:[#allocation3 + $0x628] ss:$16 sps:$4 sm:$0xff]   ;;  %v6197_v54 = vld [vmem:[#allocation3 + $0x40c] ss:$16 sps:$4 sm:$0xff]  }
 0x16d   :  { %4478 = vmatprep.subr.bf16.mxu1 %v6110_v55  ;;  %v6200_v55 = vld [vmem:[#allocation3 + $0x60c] ss:$16 sps:$4 sm:$0xff]  }
 0x16f   :  { %4436 = vmatpush2.bf16.msra.mxu0 %v6105_v56  ;;  %v6195_v56 = vld [vmem:[#allocation3 + $0x408] ss:$16 sps:$4 sm:$0xff]  }
 0x170   :  { %4479 = vmatpush2.bf16.msra.mxu1 %v6108_v57  ;;  %4437 = vmatprep.subr.bf16.mxu0 %v6113_v58  ;;  %v6198_v57 = vld [vmem:[#allocation3 + $0x608] ss:$16 sps:$4 sm:$0xff]   ;;  %v6203_v58 = vld [vmem:[#allocation3 + $0x5ec] ss:$16 sps:$4 sm:$0xff]  }
 0x171   :  { %4480 = vmatprep.subr.bf16.mxu1 %v6116_v59  ;;  %v6206_v59 = vld [vmem:[#allocation3 + $0x7ec] ss:$16 sps:$4 sm:$0xff]  }
 0x173   :  { %4438 = vmatpush2.bf16.msra.mxu0 %v6111_v60  ;;  %v6201_v60 = vld [vmem:[#allocation3 + $0x5e8] ss:$16 sps:$4 sm:$0xff]  }
 0x174   :  { %4481 = vmatpush2.bf16.msra.mxu1 %v6114_v61  ;;  %4439 = vmatprep.subr.bf16.mxu0 %v6119_v62  ;;  %v6204_v61 = vld [vmem:[#allocation3 + $0x7e8] ss:$16 sps:$4 sm:$0xff]   ;;  %v6209_v62 = vld [vmem:[#allocation3 + $0x5cc] ss:$16 sps:$4 sm:$0xff]  }
 0x175   :  { %4482 = vmatprep.subr.bf16.mxu1 %v6122_v63  ;;  %v6212_v63 = vld [vmem:[#allocation3 + $0x7cc] ss:$16 sps:$4 sm:$0xff]  }
 0x177   :  { %4440 = vmatpush2.bf16.msra.mxu0 %v6117_v0  ;;  %v6207_v0 = vld [vmem:[#allocation3 + $0x5c8] ss:$16 sps:$4 sm:$0xff]  }
 0x178   :  { %4483 = vmatpush2.bf16.msra.mxu1 %v6120_v1  ;;  %4441 = vmatprep.subr.bf16.mxu0 %v6125_v2  ;;  %v6210_v1 = vld [vmem:[#allocation3 + $0x7c8] ss:$16 sps:$4 sm:$0xff]   ;;  %v6215_v2 = vld [vmem:[#allocation3 + $0x5ac] ss:$16 sps:$4 sm:$0xff]  }
 0x179   :  { %4484 = vmatprep.subr.bf16.mxu1 %v6128_v3  ;;  %v6218_v3 = vld [vmem:[#allocation3 + $0x7ac] ss:$16 sps:$4 sm:$0xff]  }
 0x17b   :  { %4442 = vmatpush2.bf16.msra.mxu0 %v6123_v4  ;;  %v6213_v4 = vld [vmem:[#allocation3 + $0x5a8] ss:$16 sps:$4 sm:$0xff]  }
 0x17c   :  { %4485 = vmatpush2.bf16.msra.mxu1 %v6126_v5  ;;  %4443 = vmatprep.subr.bf16.mxu0 %v6131_v6  ;;  %v6216_v5 = vld [vmem:[#allocation3 + $0x7a8] ss:$16 sps:$4 sm:$0xff]   ;;  %v6221_v6 = vld [vmem:[#allocation3 + $0x58c] ss:$16 sps:$4 sm:$0xff]  }
 0x17d   :  { %4486 = vmatprep.subr.bf16.mxu1 %v6134_v7  ;;  %v6224_v7 = vld [vmem:[#allocation3 + $0x78c] ss:$16 sps:$4 sm:$0xff]  }
 0x17f   :  { %4444 = vmatpush2.bf16.msra.mxu0 %v6129_v8  ;;  %v6219_v8 = vld [vmem:[#allocation3 + $0x588] ss:$16 sps:$4 sm:$0xff]  }
 0x180   :  { %4487 = vmatpush2.bf16.msra.mxu1 %v6132_v9  ;;  %4445 = vmatprep.subr.bf16.mxu0 %v6137_v10  ;;  %v6222_v9 = vld [vmem:[#allocation3 + $0x788] ss:$16 sps:$4 sm:$0xff]   ;;  %v6227_v10 = vld [vmem:[#allocation3 + $0x56c] ss:$16 sps:$4 sm:$0xff]  }
 0x181   :  { %4488 = vmatprep.subr.bf16.mxu1 %v6140_v11  ;;  %v6230_v11 = vld [vmem:[#allocation3 + $0x76c] ss:$16 sps:$4 sm:$0xff]  }
 0x183   :  { %4446 = vmatpush2.bf16.msra.mxu0 %v6135_v12  ;;  %v6225_v12 = vld [vmem:[#allocation3 + $0x568] ss:$16 sps:$4 sm:$0xff]  }
 0x184   :  { %4489 = vmatpush2.bf16.msra.mxu1 %v6138_v13  ;;  %4447 = vmatprep.subr.bf16.mxu0 %v6143_v14  ;;  %v6228_v13 = vld [vmem:[#allocation3 + $0x768] ss:$16 sps:$4 sm:$0xff]   ;;  %v6233_v14 = vld [vmem:[#allocation3 + $0x54c] ss:$16 sps:$4 sm:$0xff]  }
 0x185   :  { %4490 = vmatprep.subr.bf16.mxu1 %v6146_v15  ;;  %v6236_v15 = vld [vmem:[#allocation3 + $0x74c] ss:$16 sps:$4 sm:$0xff]  }
 0x187   :  { %4448 = vmatpush2.bf16.msra.mxu0 %v6141_v16  ;;  %v6231_v16 = vld [vmem:[#allocation3 + $0x548] ss:$16 sps:$4 sm:$0xff]  }
 0x188   :  { %4491 = vmatpush2.bf16.msra.mxu1 %v6144_v17  ;;  %4449 = vmatprep.subr.bf16.mxu0 %v6149_v18  ;;  %v6234_v17 = vld [vmem:[#allocation3 + $0x748] ss:$16 sps:$4 sm:$0xff]   ;;  %v6239_v18 = vld [vmem:[#allocation3 + $0x52c] ss:$16 sps:$4 sm:$0xff]  }
 0x189   :  { %4492 = vmatprep.subr.bf16.mxu1 %v6152_v19  ;;  %v6242_v19 = vld [vmem:[#allocation3 + $0x72c] ss:$16 sps:$4 sm:$0xff]  }
 0x18b   :  { %4450 = vmatpush2.bf16.msra.mxu0 %v6147_v20  ;;  %v6237_v20 = vld [vmem:[#allocation3 + $0x528] ss:$16 sps:$4 sm:$0xff]  }
 0x18c   :  { %4493 = vmatpush2.bf16.msra.mxu1 %v6150_v21  ;;  %4505 = vmatprep.subr.bf16.mxu0 %v6155_v22  ;;  %v6240_v21 = vld [vmem:[#allocation3 + $0x728] ss:$16 sps:$4 sm:$0xff]   ;;  %v6245_v22 = vld [vmem:[#allocation3 + $0x50c] ss:$16 sps:$4 sm:$0xff]  }
 0x18d   :  { %4548 = vmatprep.subr.bf16.mxu1 %v6158_v23  ;;  %v6248_v23 = vld [vmem:[#allocation3 + $0x70c] ss:$16 sps:$4 sm:$0xff]  }
 0x18e   :  { %4452 = vmatmul.mubr.bf16.vlgmr.msra.gmra.mxu0 %v6539_v30  ;;  %v6257_v30 = vld [vmem:[#allocation3 + $0x8cc] ss:$16 sps:$4 sm:$0xff]  }
 0x18f   :  { %4495 = vmatmul.mubr.bf16.vlgmr.msra.gmra.mxu1 %v6540_v31  ;;  %4506 = vmatpush1.bf16.msra.mxu0 %v6153_v24  ;;  %v6243_v24 = vld [vmem:[#allocation3 + $0x508] ss:$16 sps:$4 sm:$0xff]   ;;  %v6260_v31 = vld [vmem:[#allocation3 + $0xacc] ss:$16 sps:$4 sm:$0xff]  }
 0x190   :  { %4549 = vmatpush1.bf16.msra.mxu1 %v6156_v25  ;;  %4507 = vmatprep.subr.bf16.mxu0 %v6161_v26  ;;  %v6246_v25 = vld [vmem:[#allocation3 + $0x708] ss:$16 sps:$4 sm:$0xff]   ;;  %v6251_v26 = vld [vmem:[#allocation3 + $0x8ec] ss:$16 sps:$4 sm:$0xff]  }
 0x191   :  { %4550 = vmatprep.subr.bf16.mxu1 %v6164_v27  ;;  %4537 = vmatprep.mubr.bf16.mxu0 %v6541_v36  ;;  %v6254_v27 = vld [vmem:[#allocation3 + $0xaec] ss:$16 sps:$4 sm:$0xff]  }
 0x192   :  { %4580 = vmatprep.mubr.bf16.mxu1 %v6542_v37  ;;  %v6263_v36 = vld [vmem:[#allocation3 + $0x8ac] ss:$16 sps:$4 sm:$0xff]  }
 0x193   :  { %4508 = vmatpush1.bf16.msra.mxu0 %v6159_v28  ;;  %v6249_v28 = vld [vmem:[#allocation3 + $0x8e8] ss:$16 sps:$4 sm:$0xff]   ;;  %v6266_v37 = vld [vmem:[#allocation3 + $0xaac] ss:$16 sps:$4 sm:$0xff]  }
 0x194   :  { %4551 = vmatpush1.bf16.msra.mxu1 %v6162_v29  ;;  %4509 = vmatprep.subr.bf16.mxu0 %v6167_v32  ;;  %v6252_v29 = vld [vmem:[#allocation3 + $0xae8] ss:$16 sps:$4 sm:$0xff]   ;;  %v6543_v32 = vld [vmem:[%s6812_s0 + $0x10] ss:$80 sps:$4 sm:$0xff]  }
 0x195   :  { %4552 = vmatprep.subr.bf16.mxu1 %v6170_v33  ;;  %v6544_v33 = vld [vmem:[%s6812_s0 + $0x18] ss:$80 sps:$4 sm:$0xff]  }
 0x197   :  { %4510 = vmatpush1.bf16.msra.mxu0 %v6165_v34  ;;  %v6255_v34 = vld [vmem:[#allocation3 + $0x8c8] ss:$16 sps:$4 sm:$0xff]  }
 0x198   :  { %4553 = vmatpush1.bf16.msra.mxu1 %v6168_v35  ;;  %4511 = vmatprep.subr.bf16.mxu0 %v6173_v38  ;;  %v6258_v35 = vld [vmem:[#allocation3 + $0xac8] ss:$16 sps:$4 sm:$0xff]   ;;  %v6545_v38 = vld [vmem:[%s6812_s0 + $0x24] ss:$80 sps:$4 sm:$0xff]  }
 0x199   :  { %4554 = vmatprep.subr.bf16.mxu1 %v6176_v39  ;;  %v6546_v39 = vld [vmem:[%s6812_s0 + $0x2c] ss:$80 sps:$4 sm:$0xff]  }
 0x19b   :  { %4512 = vmatpush1.bf16.msra.mxu0 %v6171_v40  ;;  %v6261_v40 = vld [vmem:[#allocation3 + $0x8a8] ss:$16 sps:$4 sm:$0xff]  }
 0x19c   :  { %4555 = vmatpush1.bf16.msra.mxu1 %v6174_v41  ;;  %4513 = vmatprep.subr.bf16.mxu0 %v6179_v42  ;;  %v6264_v41 = vld [vmem:[#allocation3 + $0xaa8] ss:$16 sps:$4 sm:$0xff]   ;;  %v6269_v42 = vld [vmem:[#allocation3 + $0x88c] ss:$16 sps:$4 sm:$0xff]  }
 0x19d   :  { %4556 = vmatprep.subr.bf16.mxu1 %v6182_v43  ;;  %v6272_v43 = vld [vmem:[#allocation3 + $0xa8c] ss:$16 sps:$4 sm:$0xff]  }
 0x19f   :  { %4514 = vmatpush1.bf16.msra.mxu0 %v6177_v44  ;;  %v6267_v44 = vld [vmem:[#allocation3 + $0x888] ss:$16 sps:$4 sm:$0xff]  }
 0x1a0   :  { %4557 = vmatpush1.bf16.msra.mxu1 %v6180_v45  ;;  %4515 = vmatprep.subr.bf16.mxu0 %v6185_v46  ;;  %v6270_v45 = vld [vmem:[#allocation3 + $0xa88] ss:$16 sps:$4 sm:$0xff]   ;;  %v6275_v46 = vld [vmem:[#allocation3 + $0x86c] ss:$16 sps:$4 sm:$0xff]  }
 0x1a1   :  { %4558 = vmatprep.subr.bf16.mxu1 %v6188_v47  ;;  %v6278_v47 = vld [vmem:[#allocation3 + $0xa6c] ss:$16 sps:$4 sm:$0xff]  }
 0x1a3   :  { %4516 = vmatpush1.bf16.msra.mxu0 %v6183_v48  ;;  %v6273_v48 = vld [vmem:[#allocation3 + $0x868] ss:$16 sps:$4 sm:$0xff]  }
 0x1a4   :  { %4559 = vmatpush1.bf16.msra.mxu1 %v6186_v49  ;;  %4517 = vmatprep.subr.bf16.mxu0 %v6191_v50  ;;  %v6276_v49 = vld [vmem:[#allocation3 + $0xa68] ss:$16 sps:$4 sm:$0xff]   ;;  %v6281_v50 = vld [vmem:[#allocation3 + $0x84c] ss:$16 sps:$4 sm:$0xff]  }
 0x1a5   :  { %4560 = vmatprep.subr.bf16.mxu1 %v6194_v51  ;;  %v6284_v51 = vld [vmem:[#allocation3 + $0xa4c] ss:$16 sps:$4 sm:$0xff]  }
 0x1a7   :  { %4518 = vmatpush1.bf16.msra.mxu0 %v6189_v52  ;;  %v6279_v52 = vld [vmem:[#allocation3 + $0x848] ss:$16 sps:$4 sm:$0xff]  }
 0x1a8   :  { %4561 = vmatpush1.bf16.msra.mxu1 %v6192_v53  ;;  %4519 = vmatprep.subr.bf16.mxu0 %v6197_v54  ;;  %v6282_v53 = vld [vmem:[#allocation3 + $0xa48] ss:$16 sps:$4 sm:$0xff]   ;;  %v6287_v54 = vld [vmem:[#allocation3 + $0x82c] ss:$16 sps:$4 sm:$0xff]  }
 0x1a9   :  { %4562 = vmatprep.subr.bf16.mxu1 %v6200_v55  ;;  %v6290_v55 = vld [vmem:[#allocation3 + $0xa2c] ss:$16 sps:$4 sm:$0xff]  }
 0x1ab   :  { %4520 = vmatpush1.bf16.msra.mxu0 %v6195_v56  ;;  %v6285_v56 = vld [vmem:[#allocation3 + $0x828] ss:$16 sps:$4 sm:$0xff]  }
 0x1ac   :  { %4563 = vmatpush1.bf16.msra.mxu1 %v6198_v57  ;;  %4521 = vmatprep.subr.bf16.mxu0 %v6203_v58  ;;  %v6288_v57 = vld [vmem:[#allocation3 + $0xa28] ss:$16 sps:$4 sm:$0xff]   ;;  %v6293_v58 = vld [vmem:[#allocation3 + $0x80c] ss:$16 sps:$4 sm:$0xff]  }
 0x1ad   :  { %4564 = vmatprep.subr.bf16.mxu1 %v6206_v59  ;;  %v6296_v59 = vld [vmem:[#allocation3 + $0xa0c] ss:$16 sps:$4 sm:$0xff]  }
 0x1af   :  { %4522 = vmatpush2.bf16.msra.mxu0 %v6201_v60  ;;  %v6291_v60 = vld [vmem:[#allocation3 + $0x808] ss:$16 sps:$4 sm:$0xff]  }
 0x1b0   :  { %4565 = vmatpush2.bf16.msra.mxu1 %v6204_v61  ;;  %4523 = vmatprep.subr.bf16.mxu0 %v6209_v62  ;;  %v6294_v61 = vld [vmem:[#allocation3 + $0xa08] ss:$16 sps:$4 sm:$0xff]   ;;  %v6299_v62 = vld [vmem:[#allocation3 + $0x9ec] ss:$16 sps:$4 sm:$0xff]  }
 0x1b1   :  { %4566 = vmatprep.subr.bf16.mxu1 %v6212_v63  ;;  %v6302_v63 = vld [vmem:[#allocation3 + $0xbec] ss:$16 sps:$4 sm:$0xff]  }
 0x1b3   :  { %4524 = vmatpush2.bf16.msra.mxu0 %v6207_v0  ;;  %v6297_v0 = vld [vmem:[#allocation3 + $0x9e8] ss:$16 sps:$4 sm:$0xff]  }
 0x1b4   :  { %4567 = vmatpush2.bf16.msra.mxu1 %v6210_v1  ;;  %4525 = vmatprep.subr.bf16.mxu0 %v6215_v2  ;;  %v6300_v1 = vld [vmem:[#allocation3 + $0xbe8] ss:$16 sps:$4 sm:$0xff]   ;;  %v6305_v2 = vld [vmem:[#allocation3 + $0x9cc] ss:$16 sps:$4 sm:$0xff]  }
 0x1b5   :  { %4568 = vmatprep.subr.bf16.mxu1 %v6218_v3  ;;  %v6308_v3 = vld [vmem:[#allocation3 + $0xbcc] ss:$16 sps:$4 sm:$0xff]  }
 0x1b7   :  { %4526 = vmatpush2.bf16.msra.mxu0 %v6213_v4  ;;  %v6303_v4 = vld [vmem:[#allocation3 + $0x9c8] ss:$16 sps:$4 sm:$0xff]  }
 0x1b8   :  { %4569 = vmatpush2.bf16.msra.mxu1 %v6216_v5  ;;  %4527 = vmatprep.subr.bf16.mxu0 %v6221_v6  ;;  %v6306_v5 = vld [vmem:[#allocation3 + $0xbc8] ss:$16 sps:$4 sm:$0xff]   ;;  %v6311_v6 = vld [vmem:[#allocation3 + $0x9ac] ss:$16 sps:$4 sm:$0xff]  }
 0x1b9   :  { %4570 = vmatprep.subr.bf16.mxu1 %v6224_v7  ;;  %v6314_v7 = vld [vmem:[#allocation3 + $0xbac] ss:$16 sps:$4 sm:$0xff]  }
 0x1bb   :  { %4528 = vmatpush2.bf16.msra.mxu0 %v6219_v8  ;;  %v6309_v8 = vld [vmem:[#allocation3 + $0x9a8] ss:$16 sps:$4 sm:$0xff]  }
 0x1bc   :  { %4571 = vmatpush2.bf16.msra.mxu1 %v6222_v9  ;;  %4529 = vmatprep.subr.bf16.mxu0 %v6227_v10  ;;  %v6312_v9 = vld [vmem:[#allocation3 + $0xba8] ss:$16 sps:$4 sm:$0xff]   ;;  %v6317_v10 = vld [vmem:[#allocation3 + $0x98c] ss:$16 sps:$4 sm:$0xff]  }
 0x1bd   :  { %4572 = vmatprep.subr.bf16.mxu1 %v6230_v11  ;;  %v6320_v11 = vld [vmem:[#allocation3 + $0xb8c] ss:$16 sps:$4 sm:$0xff]  }
 0x1bf   :  { %4530 = vmatpush2.bf16.msra.mxu0 %v6225_v12  ;;  %v6315_v12 = vld [vmem:[#allocation3 + $0x988] ss:$16 sps:$4 sm:$0xff]  }
 0x1c0   :  { %4573 = vmatpush2.bf16.msra.mxu1 %v6228_v13  ;;  %4531 = vmatprep.subr.bf16.mxu0 %v6233_v14  ;;  %v6318_v13 = vld [vmem:[#allocation3 + $0xb88] ss:$16 sps:$4 sm:$0xff]   ;;  %v6323_v14 = vld [vmem:[#allocation3 + $0x96c] ss:$16 sps:$4 sm:$0xff]  }
 0x1c1   :  { %4574 = vmatprep.subr.bf16.mxu1 %v6236_v15  ;;  %v6326_v15 = vld [vmem:[#allocation3 + $0xb6c] ss:$16 sps:$4 sm:$0xff]  }
 0x1c3   :  { %4532 = vmatpush2.bf16.msra.mxu0 %v6231_v16  ;;  %v6321_v16 = vld [vmem:[#allocation3 + $0x968] ss:$16 sps:$4 sm:$0xff]  }
 0x1c4   :  { %4575 = vmatpush2.bf16.msra.mxu1 %v6234_v17  ;;  %4533 = vmatprep.subr.bf16.mxu0 %v6239_v18  ;;  %v6324_v17 = vld [vmem:[#allocation3 + $0xb68] ss:$16 sps:$4 sm:$0xff]   ;;  %v6329_v18 = vld [vmem:[#allocation3 + $0x94c] ss:$16 sps:$4 sm:$0xff]  }
 0x1c5   :  { %4576 = vmatprep.subr.bf16.mxu1 %v6242_v19  ;;  %v6332_v19 = vld [vmem:[#allocation3 + $0xb4c] ss:$16 sps:$4 sm:$0xff]  }
 0x1c7   :  { %4534 = vmatpush2.bf16.msra.mxu0 %v6237_v20  ;;  %v6327_v20 = vld [vmem:[#allocation3 + $0x948] ss:$16 sps:$4 sm:$0xff]  }
 0x1c8   :  { %4577 = vmatpush2.bf16.msra.mxu1 %v6240_v21  ;;  %4535 = vmatprep.subr.bf16.mxu0 %v6245_v22  ;;  %v6330_v21 = vld [vmem:[#allocation3 + $0xb48] ss:$16 sps:$4 sm:$0xff]   ;;  %v6335_v22 = vld [vmem:[#allocation3 + $0x92c] ss:$16 sps:$4 sm:$0xff]  }
 0x1c9   :  { %4578 = vmatprep.subr.bf16.mxu1 %v6248_v23  ;;  %v6338_v23 = vld [vmem:[#allocation3 + $0xb2c] ss:$16 sps:$4 sm:$0xff]  }
 0x1cb   :  { %4536 = vmatpush2.bf16.msra.mxu0 %v6243_v24  ;;  %v6333_v24 = vld [vmem:[#allocation3 + $0x928] ss:$16 sps:$4 sm:$0xff]  }
 0x1cc   :  { %4579 = vmatpush2.bf16.msra.mxu1 %v6246_v25  ;;  %4591 = vmatprep.subr.bf16.mxu0 %v6251_v26  ;;  %v6336_v25 = vld [vmem:[#allocation3 + $0xb28] ss:$16 sps:$4 sm:$0xff]   ;;  %v6341_v26 = vld [vmem:[#allocation3 + $0x90c] ss:$16 sps:$4 sm:$0xff]  }
 0x1cd   :  { %4634 = vmatprep.subr.bf16.mxu1 %v6254_v27  ;;  %v6344_v27 = vld [vmem:[#allocation3 + $0xb0c] ss:$16 sps:$4 sm:$0xff]  }
 0x1ce   :  { %4538 = vmatmul.mubr.bf16.vlgmr.msra.gmra.mxu0 %v6543_v32  ;;  %v6345_v32 = vld [vmem:[#allocation3 + $0xce8] ss:$16 sps:$4 sm:$0xff]  }
 0x1cf   :  { %4581 = vmatmul.mubr.bf16.vlgmr.msra.gmra.mxu1 %v6544_v33  ;;  %4592 = vmatpush1.bf16.msra.mxu0 %v6249_v28  ;;  %v6339_v28 = vld [vmem:[#allocation3 + $0x908] ss:$16 sps:$4 sm:$0xff]  }
 0x1d0   :  { %4635 = vmatpush1.bf16.msra.mxu1 %v6252_v29  ;;  %4593 = vmatprep.subr.bf16.mxu0 %v6257_v30  ;;  %v6342_v29 = vld [vmem:[#allocation3 + $0xb08] ss:$16 sps:$4 sm:$0xff]   ;;  %v6347_v30 = vld [vmem:[#allocation3 + $0xcec] ss:$16 sps:$4 sm:$0xff]  }
 0x1d1   :  { %4636 = vmatprep.subr.bf16.mxu1 %v6260_v31  ;;  %4623 = vmatprep.mubr.bf16.mxu0 %v6545_v38  ;;  %v6350_v31 = vld [vmem:[#allocation3 + $0xeec] ss:$16 sps:$4 sm:$0xff]   ;;  %v6348_v33 = vld [vmem:[#allocation3 + $0xee8] ss:$16 sps:$4 sm:$0xff]  }
 0x1d2   :  { %4666 = vmatprep.mubr.bf16.mxu1 %v6546_v39  ;;  %v6351_v38 = vld [vmem:[#allocation3 + $0xcc8] ss:$16 sps:$4 sm:$0xff]  }
 0x1d3   :  { %4594 = vmatpush1.bf16.msra.mxu0 %v6255_v34  ;;  %v6353_v34 = vld [vmem:[#allocation3 + $0xccc] ss:$16 sps:$4 sm:$0xff]   ;;  %v6354_v39 = vld [vmem:[#allocation3 + $0xec8] ss:$16 sps:$4 sm:$0xff]  }
 0x1d4   :  { %4637 = vmatpush1.bf16.msra.mxu1 %v6258_v35  ;;  %4595 = vmatprep.subr.bf16.mxu0 %v6263_v36  ;;  %v6356_v35 = vld [vmem:[#allocation3 + $0xecc] ss:$16 sps:$4 sm:$0xff]   ;;  %v6547_v36 = vld [vmem:[%s6812_s0 + $0x20] ss:$80 sps:$4 sm:$0xff]  }
 0x1d5   :  { %4638 = vmatprep.subr.bf16.mxu1 %v6266_v37  ;;  %v6548_v37 = vld [vmem:[%s6812_s0 + $0x28] ss:$80 sps:$4 sm:$0xff]  }
 0x1d7   :  { %4596 = vmatpush1.bf16.msra.mxu0 %v6261_v40  ;;  %v6359_v40 = vld [vmem:[#allocation3 + $0xcac] ss:$16 sps:$4 sm:$0xff]  }
 0x1d8   :  { %4639 = vmatpush1.bf16.msra.mxu1 %v6264_v41  ;;  %4597 = vmatprep.subr.bf16.mxu0 %v6269_v42  ;;  %v6362_v41 = vld [vmem:[#allocation3 + $0xeac] ss:$16 sps:$4 sm:$0xff]   ;;  %v6549_v42 = vld [vmem:[%s6812_s0 + $0x34] ss:$80 sps:$4 sm:$0xff]  }
 0x1d9   :  { %4640 = vmatprep.subr.bf16.mxu1 %v6272_v43  ;;  %v6550_v43 = vld [vmem:[%s6812_s0 + $0x3c] ss:$80 sps:$4 sm:$0xff]  }
 0x1db   :  { %4598 = vmatpush1.bf16.msra.mxu0 %v6267_v44  ;;  %v6357_v44 = vld [vmem:[#allocation3 + $0xca8] ss:$16 sps:$4 sm:$0xff]  }
 0x1dc   :  { %4641 = vmatpush1.bf16.msra.mxu1 %v6270_v45  ;;  %4599 = vmatprep.subr.bf16.mxu0 %v6275_v46  ;;  %v6360_v45 = vld [vmem:[#allocation3 + $0xea8] ss:$16 sps:$4 sm:$0xff]   ;;  %v6365_v46 = vld [vmem:[#allocation3 + $0xc8c] ss:$16 sps:$4 sm:$0xff]  }
 0x1dd   :  { %4642 = vmatprep.subr.bf16.mxu1 %v6278_v47  ;;  %v6368_v47 = vld [vmem:[#allocation3 + $0xe8c] ss:$16 sps:$4 sm:$0xff]  }
 0x1df   :  { %4600 = vmatpush1.bf16.msra.mxu0 %v6273_v48  ;;  %v6363_v48 = vld [vmem:[#allocation3 + $0xc88] ss:$16 sps:$4 sm:$0xff]  }
 0x1e0   :  { %4643 = vmatpush1.bf16.msra.mxu1 %v6276_v49  ;;  %4601 = vmatprep.subr.bf16.mxu0 %v6281_v50  ;;  %v6366_v49 = vld [vmem:[#allocation3 + $0xe88] ss:$16 sps:$4 sm:$0xff]   ;;  %v6371_v50 = vld [vmem:[#allocation3 + $0xc6c] ss:$16 sps:$4 sm:$0xff]  }
 0x1e1   :  { %4644 = vmatprep.subr.bf16.mxu1 %v6284_v51  ;;  %v6374_v51 = vld [vmem:[#allocation3 + $0xe6c] ss:$16 sps:$4 sm:$0xff]  }
 0x1e3   :  { %4602 = vmatpush1.bf16.msra.mxu0 %v6279_v52  ;;  %v6369_v52 = vld [vmem:[#allocation3 + $0xc68] ss:$16 sps:$4 sm:$0xff]  }
 0x1e4   :  { %4645 = vmatpush1.bf16.msra.mxu1 %v6282_v53  ;;  %4603 = vmatprep.subr.bf16.mxu0 %v6287_v54  ;;  %v6372_v53 = vld [vmem:[#allocation3 + $0xe68] ss:$16 sps:$4 sm:$0xff]   ;;  %v6377_v54 = vld [vmem:[#allocation3 + $0xc4c] ss:$16 sps:$4 sm:$0xff]  }
 0x1e5   :  { %4646 = vmatprep.subr.bf16.mxu1 %v6290_v55  ;;  %v6380_v55 = vld [vmem:[#allocation3 + $0xe4c] ss:$16 sps:$4 sm:$0xff]  }
 0x1e7   :  { %4604 = vmatpush1.bf16.msra.mxu0 %v6285_v56  ;;  %v6375_v56 = vld [vmem:[#allocation3 + $0xc48] ss:$16 sps:$4 sm:$0xff]  }
 0x1e8   :  { %4647 = vmatpush1.bf16.msra.mxu1 %v6288_v57  ;;  %4605 = vmatprep.subr.bf16.mxu0 %v6293_v58  ;;  %v6378_v57 = vld [vmem:[#allocation3 + $0xe48] ss:$16 sps:$4 sm:$0xff]   ;;  %v6383_v58 = vld [vmem:[#allocation3 + $0xc2c] ss:$16 sps:$4 sm:$0xff]  }
 0x1e9   :  { %4648 = vmatprep.subr.bf16.mxu1 %v6296_v59  ;;  %v6386_v59 = vld [vmem:[#allocation3 + $0xe2c] ss:$16 sps:$4 sm:$0xff]  }
 0x1eb   :  { %4606 = vmatpush1.bf16.msra.mxu0 %v6291_v60  ;;  %v6381_v60 = vld [vmem:[#allocation3 + $0xc28] ss:$16 sps:$4 sm:$0xff]  }
 0x1ec   :  { %4649 = vmatpush1.bf16.msra.mxu1 %v6294_v61  ;;  %4607 = vmatprep.subr.bf16.mxu0 %v6299_v62  ;;  %v6384_v61 = vld [vmem:[#allocation3 + $0xe28] ss:$16 sps:$4 sm:$0xff]   ;;  %v6389_v62 = vld [vmem:[#allocation3 + $0xc0c] ss:$16 sps:$4 sm:$0xff]  }
 0x1ed   :  { %4650 = vmatprep.subr.bf16.mxu1 %v6302_v63  ;;  %v6392_v63 = vld [vmem:[#allocation3 + $0xe0c] ss:$16 sps:$4 sm:$0xff]  }
 0x1ef   :  { %4608 = vmatpush2.bf16.msra.mxu0 %v6297_v0  ;;  %v6387_v0 = vld [vmem:[#allocation3 + $0xc08] ss:$16 sps:$4 sm:$0xff]  }
 0x1f0   :  { %4651 = vmatpush2.bf16.msra.mxu1 %v6300_v1  ;;  %4609 = vmatprep.subr.bf16.mxu0 %v6305_v2  ;;  %v6390_v1 = vld [vmem:[#allocation3 + $0xe08] ss:$16 sps:$4 sm:$0xff]   ;;  %v6395_v2 = vld [vmem:[#allocation3 + $0xdec] ss:$16 sps:$4 sm:$0xff]  }
 0x1f1   :  { %4652 = vmatprep.subr.bf16.mxu1 %v6308_v3  ;;  %v6398_v3 = vld [vmem:[#allocation3 + $0xfec] ss:$16 sps:$4 sm:$0xff]  }
 0x1f3   :  { %4610 = vmatpush2.bf16.msra.mxu0 %v6303_v4  ;;  %v6393_v4 = vld [vmem:[#allocation3 + $0xde8] ss:$16 sps:$4 sm:$0xff]  }
 0x1f4   :  { %4653 = vmatpush2.bf16.msra.mxu1 %v6306_v5  ;;  %4611 = vmatprep.subr.bf16.mxu0 %v6311_v6  ;;  %v6396_v5 = vld [vmem:[#allocation3 + $0xfe8] ss:$16 sps:$4 sm:$0xff]   ;;  %v6401_v6 = vld [vmem:[#allocation3 + $0xdcc] ss:$16 sps:$4 sm:$0xff]  }
 0x1f5   :  { %4654 = vmatprep.subr.bf16.mxu1 %v6314_v7  ;;  %v6404_v7 = vld [vmem:[#allocation3 + $0xfcc] ss:$16 sps:$4 sm:$0xff]  }
 0x1f7   :  { %4612 = vmatpush2.bf16.msra.mxu0 %v6309_v8  ;;  %v6399_v8 = vld [vmem:[#allocation3 + $0xdc8] ss:$16 sps:$4 sm:$0xff]  }
 0x1f8   :  { %4655 = vmatpush2.bf16.msra.mxu1 %v6312_v9  ;;  %4613 = vmatprep.subr.bf16.mxu0 %v6317_v10  ;;  %v6402_v9 = vld [vmem:[#allocation3 + $0xfc8] ss:$16 sps:$4 sm:$0xff]   ;;  %v6407_v10 = vld [vmem:[#allocation3 + $0xdac] ss:$16 sps:$4 sm:$0xff]  }
 0x1f9   :  { %4656 = vmatprep.subr.bf16.mxu1 %v6320_v11  ;;  %v6410_v11 = vld [vmem:[#allocation3 + $0xfac] ss:$16 sps:$4 sm:$0xff]  }
 0x1fb   :  { %4614 = vmatpush2.bf16.msra.mxu0 %v6315_v12  ;;  %v6405_v12 = vld [vmem:[#allocation3 + $0xda8] ss:$16 sps:$4 sm:$0xff]  }
 0x1fc   :  { %4657 = vmatpush2.bf16.msra.mxu1 %v6318_v13  ;;  %4615 = vmatprep.subr.bf16.mxu0 %v6323_v14  ;;  %v6408_v13 = vld [vmem:[#allocation3 + $0xfa8] ss:$16 sps:$4 sm:$0xff]   ;;  %v6413_v14 = vld [vmem:[#allocation3 + $0xd8c] ss:$16 sps:$4 sm:$0xff]  }
 0x1fd   :  { %4658 = vmatprep.subr.bf16.mxu1 %v6326_v15  ;;  %v6416_v15 = vld [vmem:[#allocation3 + $0xf8c] ss:$16 sps:$4 sm:$0xff]  }
 0x1ff   :  { %4616 = vmatpush2.bf16.msra.mxu0 %v6321_v16  ;;  %v6411_v16 = vld [vmem:[#allocation3 + $0xd88] ss:$16 sps:$4 sm:$0xff]  }
 0x200   :  { %4659 = vmatpush2.bf16.msra.mxu1 %v6324_v17  ;;  %4617 = vmatprep.subr.bf16.mxu0 %v6329_v18  ;;  %v6414_v17 = vld [vmem:[#allocation3 + $0xf88] ss:$16 sps:$4 sm:$0xff]   ;;  %v6419_v18 = vld [vmem:[#allocation3 + $0xd6c] ss:$16 sps:$4 sm:$0xff]  }
 0x201   :  { %4660 = vmatprep.subr.bf16.mxu1 %v6332_v19  ;;  %v6422_v19 = vld [vmem:[#allocation3 + $0xf6c] ss:$16 sps:$4 sm:$0xff]  }
 0x203   :  { %4618 = vmatpush2.bf16.msra.mxu0 %v6327_v20  ;;  %v6417_v20 = vld [vmem:[#allocation3 + $0xd68] ss:$16 sps:$4 sm:$0xff]  }
 0x204   :  { %4661 = vmatpush2.bf16.msra.mxu1 %v6330_v21  ;;  %4619 = vmatprep.subr.bf16.mxu0 %v6335_v22  ;;  %v6420_v21 = vld [vmem:[#allocation3 + $0xf68] ss:$16 sps:$4 sm:$0xff]   ;;  %v6425_v22 = vld [vmem:[#allocation3 + $0xd4c] ss:$16 sps:$4 sm:$0xff]  }
 0x205   :  { %4662 = vmatprep.subr.bf16.mxu1 %v6338_v23  ;;  %v6428_v23 = vld [vmem:[#allocation3 + $0xf4c] ss:$16 sps:$4 sm:$0xff]  }
 0x207   :  { %4620 = vmatpush2.bf16.msra.mxu0 %v6333_v24  ;;  %v6423_v24 = vld [vmem:[#allocation3 + $0xd48] ss:$16 sps:$4 sm:$0xff]  }
 0x208   :  { %4663 = vmatpush2.bf16.msra.mxu1 %v6336_v25  ;;  %4621 = vmatprep.subr.bf16.mxu0 %v6341_v26  ;;  %v6426_v25 = vld [vmem:[#allocation3 + $0xf48] ss:$16 sps:$4 sm:$0xff]   ;;  %v6431_v26 = vld [vmem:[#allocation3 + $0xd2c] ss:$16 sps:$4 sm:$0xff]  }
 0x209   :  { %4664 = vmatprep.subr.bf16.mxu1 %v6344_v27  ;;  %v6434_v27 = vld [vmem:[#allocation3 + $0xf2c] ss:$16 sps:$4 sm:$0xff]  }
 0x20b   :  { %4622 = vmatpush2.bf16.msra.mxu0 %v6339_v28  ;;  %v6429_v28 = vld [vmem:[#allocation3 + $0xd28] ss:$16 sps:$4 sm:$0xff]  }
 0x20c   :  { %4665 = vmatpush2.bf16.msra.mxu1 %v6342_v29  ;;  %4677 = vmatprep.subr.bf16.mxu0 %v6347_v30  ;;  %v6432_v29 = vld [vmem:[#allocation3 + $0xf28] ss:$16 sps:$4 sm:$0xff]   ;;  %v6437_v30 = vld [vmem:[#allocation3 + $0xd0c] ss:$16 sps:$4 sm:$0xff]  }
 0x20d   :  { %4720 = vmatprep.subr.bf16.mxu1 %v6350_v31  ;;  %v6440_v31 = vld [vmem:[#allocation3 + $0xf0c] ss:$16 sps:$4 sm:$0xff]  }
 0x20e   :  { %4624 = vmatmul.mubr.bf16.vlgmr.msra.gmra.mxu0 %v6547_v36  ;;  %v6441_v36 = vld [vmem:[#allocation3 + $0x10e8] ss:$16 sps:$4 sm:$0xff]  }
 0x20f   :  { %4667 = vmatmul.mubr.bf16.vlgmr.msra.gmra.mxu1 %v6548_v37  ;;  %4678 = vmatpush1.bf16.msra.mxu0 %v6345_v32  ;;  %v6435_v32 = vld [vmem:[#allocation3 + $0xd08] ss:$16 sps:$4 sm:$0xff]  }
 0x210   :  { %4721 = vmatpush1.bf16.msra.mxu1 %v6348_v33  ;;  %4679 = vmatprep.subr.bf16.mxu0 %v6353_v34  ;;  %v6438_v33 = vld [vmem:[#allocation3 + $0xf08] ss:$16 sps:$4 sm:$0xff]   ;;  %v6443_v34 = vld [vmem:[#allocation3 + $0x10ec] ss:$16 sps:$4 sm:$0xff]  }
 0x211   :  { %4722 = vmatprep.subr.bf16.mxu1 %v6356_v35  ;;  %4709 = vmatprep.mubr.bf16.mxu0 %v6549_v42  ;;  %v6446_v35 = vld [vmem:[#allocation3 + $0x12ec] ss:$16 sps:$4 sm:$0xff]   ;;  %v6444_v37 = vld [vmem:[#allocation3 + $0x12e8] ss:$16 sps:$4 sm:$0xff]  }
 0x212   :  { %4752 = vmatprep.mubr.bf16.mxu1 %v6550_v43  ;;  %v6447_v42 = vld [vmem:[#allocation3 + $0x10c8] ss:$16 sps:$4 sm:$0xff]  }
 0x213   :  { %4680 = vmatpush1.bf16.msra.mxu0 %v6351_v38  ;;  %v6449_v38 = vld [vmem:[#allocation3 + $0x10cc] ss:$16 sps:$4 sm:$0xff]   ;;  %v6450_v43 = vld [vmem:[#allocation3 + $0x12c8] ss:$16 sps:$4 sm:$0xff]  }
 0x214   :  { %4723 = vmatpush1.bf16.msra.mxu1 %v6354_v39  ;;  %4681 = vmatprep.subr.bf16.mxu0 %v6359_v40  ;;  %v6452_v39 = vld [vmem:[#allocation3 + $0x12cc] ss:$16 sps:$4 sm:$0xff]   ;;  %v6551_v40 = vld [vmem:[%s6812_s0 + $0x30] ss:$80 sps:$4 sm:$0xff]  }
 0x215   :  { %4724 = vmatprep.subr.bf16.mxu1 %v6362_v41  ;;  %v6552_v41 = vld [vmem:[%s6812_s0 + $0x38] ss:$80 sps:$4 sm:$0xff]  }
 0x217   :  { %4682 = vmatpush1.bf16.msra.mxu0 %v6357_v44  ;;  %v6455_v44 = vld [vmem:[#allocation3 + $0x10ac] ss:$16 sps:$4 sm:$0xff]  }
 0x218   :  { %4725 = vmatpush1.bf16.msra.mxu1 %v6360_v45  ;;  %4683 = vmatprep.subr.bf16.mxu0 %v6365_v46  ;;  %v6458_v45 = vld [vmem:[#allocation3 + $0x12ac] ss:$16 sps:$4 sm:$0xff]   ;;  %v6553_v46 = vld [vmem:[%s6812_s0 + $0x44] ss:$80 sps:$4 sm:$0xff]  }
 0x219   :  { %4726 = vmatprep.subr.bf16.mxu1 %v6368_v47  ;;  %v6554_v47 = vld [vmem:[%s6812_s0 + $0x4c] ss:$80 sps:$4 sm:$0xff]  }
 0x21b   :  { %4684 = vmatpush1.bf16.msra.mxu0 %v6363_v48  ;;  %v6453_v48 = vld [vmem:[#allocation3 + $0x10a8] ss:$16 sps:$4 sm:$0xff]  }
 0x21c   :  { %4727 = vmatpush1.bf16.msra.mxu1 %v6366_v49  ;;  %4685 = vmatprep.subr.bf16.mxu0 %v6371_v50  ;;  %v6456_v49 = vld [vmem:[#allocation3 + $0x12a8] ss:$16 sps:$4 sm:$0xff]   ;;  %v6461_v50 = vld [vmem:[#allocation3 + $0x108c] ss:$16 sps:$4 sm:$0xff]  }
 0x21d   :  { %4728 = vmatprep.subr.bf16.mxu1 %v6374_v51  ;;  %v6464_v51 = vld [vmem:[#allocation3 + $0x128c] ss:$16 sps:$4 sm:$0xff]  }
 0x21f   :  { %4686 = vmatpush1.bf16.msra.mxu0 %v6369_v52  ;;  %v6459_v52 = vld [vmem:[#allocation3 + $0x1088] ss:$16 sps:$4 sm:$0xff]  }
 0x220   :  { %4729 = vmatpush1.bf16.msra.mxu1 %v6372_v53  ;;  %4687 = vmatprep.subr.bf16.mxu0 %v6377_v54  ;;  %v6462_v53 = vld [vmem:[#allocation3 + $0x1288] ss:$16 sps:$4 sm:$0xff]   ;;  %v6467_v54 = vld [vmem:[#allocation3 + $0x106c] ss:$16 sps:$4 sm:$0xff]  }
 0x221   :  { %4730 = vmatprep.subr.bf16.mxu1 %v6380_v55  ;;  %v6470_v55 = vld [vmem:[#allocation3 + $0x126c] ss:$16 sps:$4 sm:$0xff]  }
 0x223   :  { %4688 = vmatpush1.bf16.msra.mxu0 %v6375_v56  ;;  %v6465_v56 = vld [vmem:[#allocation3 + $0x1068] ss:$16 sps:$4 sm:$0xff]  }
 0x224   :  { %4731 = vmatpush1.bf16.msra.mxu1 %v6378_v57  ;;  %4689 = vmatprep.subr.bf16.mxu0 %v6383_v58  ;;  %v6468_v57 = vld [vmem:[#allocation3 + $0x1268] ss:$16 sps:$4 sm:$0xff]   ;;  %v6473_v58 = vld [vmem:[#allocation3 + $0x104c] ss:$16 sps:$4 sm:$0xff]  }
 0x225   :  { %4732 = vmatprep.subr.bf16.mxu1 %v6386_v59  ;;  %v6476_v59 = vld [vmem:[#allocation3 + $0x124c] ss:$16 sps:$4 sm:$0xff]  }
 0x227   :  { %4690 = vmatpush1.bf16.msra.mxu0 %v6381_v60  ;;  %v6471_v60 = vld [vmem:[#allocation3 + $0x1048] ss:$16 sps:$4 sm:$0xff]  }
 0x228   :  { %4733 = vmatpush1.bf16.msra.mxu1 %v6384_v61  ;;  %4691 = vmatprep.subr.bf16.mxu0 %v6389_v62  ;;  %v6474_v61 = vld [vmem:[#allocation3 + $0x1248] ss:$16 sps:$4 sm:$0xff]   ;;  %v6479_v62 = vld [vmem:[#allocation3 + $0x102c] ss:$16 sps:$4 sm:$0xff]  }
 0x229   :  { %4734 = vmatprep.subr.bf16.mxu1 %v6392_v63  ;;  %v6482_v63 = vld [vmem:[#allocation3 + $0x122c] ss:$16 sps:$4 sm:$0xff]  }
 0x22b   :  { %4692 = vmatpush1.bf16.msra.mxu0 %v6387_v0  ;;  %v6477_v0 = vld [vmem:[#allocation3 + $0x1028] ss:$16 sps:$4 sm:$0xff]  }
 0x22c   :  { %4735 = vmatpush1.bf16.msra.mxu1 %v6390_v1  ;;  %4693 = vmatprep.subr.bf16.mxu0 %v6395_v2  ;;  %v6480_v1 = vld [vmem:[#allocation3 + $0x1228] ss:$16 sps:$4 sm:$0xff]   ;;  %v6485_v2 = vld [vmem:[#allocation3 + $0x100c] ss:$16 sps:$4 sm:$0xff]  }
 0x22d   :  { %4736 = vmatprep.subr.bf16.mxu1 %v6398_v3  ;;  %v6488_v3 = vld [vmem:[#allocation3 + $0x120c] ss:$16 sps:$4 sm:$0xff]  }
 0x22f   :  { %4694 = vmatpush2.bf16.msra.mxu0 %v6393_v4  ;;  %v6483_v4 = vld [vmem:[#allocation3 + $0x1008] ss:$16 sps:$4 sm:$0xff]  }
 0x230   :  { %4737 = vmatpush2.bf16.msra.mxu1 %v6396_v5  ;;  %4695 = vmatprep.subr.bf16.mxu0 %v6401_v6  ;;  %v6486_v5 = vld [vmem:[#allocation3 + $0x1208] ss:$16 sps:$4 sm:$0xff]   ;;  %v6491_v6 = vld [vmem:[#allocation3 + $0x11ec] ss:$16 sps:$4 sm:$0xff]  }
 0x231   :  { %4738 = vmatprep.subr.bf16.mxu1 %v6404_v7  ;;  %v6494_v7 = vld [vmem:[#allocation3 + $0x13ec] ss:$16 sps:$4 sm:$0xff]  }
 0x233   :  { %4696 = vmatpush2.bf16.msra.mxu0 %v6399_v8  ;;  %v6489_v8 = vld [vmem:[#allocation3 + $0x11e8] ss:$16 sps:$4 sm:$0xff]  }
 0x234   :  { %4739 = vmatpush2.bf16.msra.mxu1 %v6402_v9  ;;  %4697 = vmatprep.subr.bf16.mxu0 %v6407_v10  ;;  %v6492_v9 = vld [vmem:[#allocation3 + $0x13e8] ss:$16 sps:$4 sm:$0xff]   ;;  %v6497_v10 = vld [vmem:[#allocation3 + $0x11cc] ss:$16 sps:$4 sm:$0xff]  }
 0x235   :  { %4740 = vmatprep.subr.bf16.mxu1 %v6410_v11  ;;  %v6500_v11 = vld [vmem:[#allocation3 + $0x13cc] ss:$16 sps:$4 sm:$0xff]  }
 0x237   :  { %4698 = vmatpush2.bf16.msra.mxu0 %v6405_v12  ;;  %v6495_v12 = vld [vmem:[#allocation3 + $0x11c8] ss:$16 sps:$4 sm:$0xff]  }
 0x238   :  { %4741 = vmatpush2.bf16.msra.mxu1 %v6408_v13  ;;  %4699 = vmatprep.subr.bf16.mxu0 %v6413_v14  ;;  %v6498_v13 = vld [vmem:[#allocation3 + $0x13c8] ss:$16 sps:$4 sm:$0xff]   ;;  %v6503_v14 = vld [vmem:[#allocation3 + $0x11ac] ss:$16 sps:$4 sm:$0xff]  }
 0x239   :  { %4742 = vmatprep.subr.bf16.mxu1 %v6416_v15  ;;  %v6506_v15 = vld [vmem:[#allocation3 + $0x13ac] ss:$16 sps:$4 sm:$0xff]  }
 0x23b   :  { %4700 = vmatpush2.bf16.msra.mxu0 %v6411_v16  ;;  %v6501_v16 = vld [vmem:[#allocation3 + $0x11a8] ss:$16 sps:$4 sm:$0xff]  }
 0x23c   :  { %4743 = vmatpush2.bf16.msra.mxu1 %v6414_v17  ;;  %4701 = vmatprep.subr.bf16.mxu0 %v6419_v18  ;;  %v6504_v17 = vld [vmem:[#allocation3 + $0x13a8] ss:$16 sps:$4 sm:$0xff]   ;;  %v6509_v18 = vld [vmem:[#allocation3 + $0x118c] ss:$16 sps:$4 sm:$0xff]  }
 0x23d   :  { %4744 = vmatprep.subr.bf16.mxu1 %v6422_v19  ;;  %v6512_v19 = vld [vmem:[#allocation3 + $0x138c] ss:$16 sps:$4 sm:$0xff]  }
 0x23f   :  { %4702 = vmatpush2.bf16.msra.mxu0 %v6417_v20  ;;  %v6507_v20 = vld [vmem:[#allocation3 + $0x1188] ss:$16 sps:$4 sm:$0xff]  }
 0x240   :  { %4745 = vmatpush2.bf16.msra.mxu1 %v6420_v21  ;;  %4703 = vmatprep.subr.bf16.mxu0 %v6425_v22  ;;  %v6510_v21 = vld [vmem:[#allocation3 + $0x1388] ss:$16 sps:$4 sm:$0xff]   ;;  %v6515_v22 = vld [vmem:[#allocation3 + $0x116c] ss:$16 sps:$4 sm:$0xff]  }
 0x241   :  { %4746 = vmatprep.subr.bf16.mxu1 %v6428_v23  ;;  %v6518_v23 = vld [vmem:[#allocation3 + $0x136c] ss:$16 sps:$4 sm:$0xff]  }
 0x243   :  { %4704 = vmatpush2.bf16.msra.mxu0 %v6423_v24  ;;  %v6513_v24 = vld [vmem:[#allocation3 + $0x1168] ss:$16 sps:$4 sm:$0xff]  }
 0x244   :  { %4747 = vmatpush2.bf16.msra.mxu1 %v6426_v25  ;;  %4705 = vmatprep.subr.bf16.mxu0 %v6431_v26  ;;  %v6516_v25 = vld [vmem:[#allocation3 + $0x1368] ss:$16 sps:$4 sm:$0xff]   ;;  %v6521_v26 = vld [vmem:[#allocation3 + $0x114c] ss:$16 sps:$4 sm:$0xff]  }
 0x245   :  { %4748 = vmatprep.subr.bf16.mxu1 %v6434_v27  ;;  %v6524_v27 = vld [vmem:[#allocation3 + $0x134c] ss:$16 sps:$4 sm:$0xff]  }
 0x247   :  { %4706 = vmatpush2.bf16.msra.mxu0 %v6429_v28  ;;  %v6519_v28 = vld [vmem:[#allocation3 + $0x1148] ss:$16 sps:$4 sm:$0xff]  }
 0x248   :  { %4749 = vmatpush2.bf16.msra.mxu1 %v6432_v29  ;;  %4707 = vmatprep.subr.bf16.mxu0 %v6437_v30  ;;  %v6522_v29 = vld [vmem:[#allocation3 + $0x1348] ss:$16 sps:$4 sm:$0xff]   ;;  %v6527_v30 = vld [vmem:[#allocation3 + $0x112c] ss:$16 sps:$4 sm:$0xff]  }
 0x249   :  { %4750 = vmatprep.subr.bf16.mxu1 %v6440_v31  ;;  %v6530_v31 = vld [vmem:[#allocation3 + $0x132c] ss:$16 sps:$4 sm:$0xff]  }
 0x24b   :  { %4708 = vmatpush2.bf16.msra.mxu0 %v6435_v32  ;;  %v6525_v32 = vld [vmem:[#allocation3 + $0x1128] ss:$16 sps:$4 sm:$0xff]  }
 0x24c   :  { %4751 = vmatpush2.bf16.msra.mxu1 %v6438_v33  ;;  %4763 = vmatprep.subr.bf16.mxu0 %v6443_v34  ;;  %v6528_v33 = vld [vmem:[#allocation3 + $0x1328] ss:$16 sps:$4 sm:$0xff]   ;;  %v6533_v34 = vld [vmem:[#allocation3 + $0x110c] ss:$16 sps:$4 sm:$0xff]  }
 0x24d   :  { %4806 = vmatprep.subr.bf16.mxu1 %v6446_v35  ;;  %v6536_v35 = vld [vmem:[#allocation3 + $0x130c] ss:$16 sps:$4 sm:$0xff]  }
 0x24e   :  { %4710 = vmatmul.mubr.bf16.vlgmr.msra.gmra.mxu0 %v6551_v40  ;;  %v6725_v40 = vpop.f32.mrf.mxu0 }
 0x24f   :  { %4753 = vmatmul.mubr.bf16.vlgmr.msra.gmra.mxu1 %v6552_v41  ;;  %4764 = vmatpush1.bf16.msra.mxu0 %v6441_v36  ;;  %v6531_v36 = vld [vmem:[#allocation3 + $0x1108] ss:$16 sps:$4 sm:$0xff]   ;;  %v4066_v41 = vpop.f32.mrf.mxu1 }
 0x250   :  { %4807 = vmatpush1.bf16.msra.mxu1 %v6444_v37  ;;  %4765 = vmatprep.subr.bf16.mxu0 %v6449_v38  ;;  %v6534_v37 = vld [vmem:[#allocation3 + $0x1308] ss:$16 sps:$4 sm:$0xff]   ;;  %v6555_v38 = vld [vmem:[%s6812_s0 + $0x40] ss:$80 sps:$4 sm:$0xff]  }
 0x251   :  { %4808 = vmatprep.subr.bf16.mxu1 %v6452_v39  ;;  %4795 = vmatprep.mubr.bf16.mxu0 %v6553_v46  ;;  %v6556_v39 = vld [vmem:[%s6812_s0 + $0x48] ss:$80 sps:$4 sm:$0xff]  }
 0x252   :  { %4838 = vmatprep.mubr.bf16.mxu1 %v6554_v47 }
 0x253   :  { %4766 = vmatpush1.bf16.msra.mxu0 %v6447_v42  ;;  %v4025_v42 = vpop.f32.mrf.mxu0 }
 0x254   :  { %4809 = vmatpush1.bf16.msra.mxu1 %v6450_v43  ;;  %4767 = vmatprep.subr.bf16.mxu0 %v6455_v44  ;;  %v4068_v43 = vpop.f32.mrf.mxu1 }
 0x255   :  { %4810 = vmatprep.subr.bf16.mxu1 %v6458_v45  ;;  %v6727_v44 = vpop.f32.mrf.mxu0 }
 0x256   :  { %v6729_v45 = vpop.f32.mrf.mxu1 }
 0x257   :  { %4768 = vmatpush1.bf16.msra.mxu0 %v6453_v48  ;;  %v4029_v46 = vpop.f32.mrf.mxu0 }
 0x258   :  { %4811 = vmatpush1.bf16.msra.mxu1 %v6456_v49  ;;  %4769 = vmatprep.subr.bf16.mxu0 %v6461_v50  ;;  %v4072_v47 = vpop.f32.mrf.mxu1 }
 0x259   :  { %4812 = vmatprep.subr.bf16.mxu1 %v6464_v51  ;;  %v4109_v48 = vpop.f32.mrf.mxu0 }
 0x25a   :  { %v6731_v49 = vpop.f32.mrf.mxu1 }
 0x25b   :  { %4770 = vmatpush1.bf16.msra.mxu0 %v6459_v52  ;;  %v4111_v50 = vpop.f32.mrf.mxu0 }
 0x25c   :  { %4813 = vmatpush1.bf16.msra.mxu1 %v6462_v53  ;;  %4771 = vmatprep.subr.bf16.mxu0 %v6467_v54  ;;  %v4154_v51 = vpop.f32.mrf.mxu1 }
 0x25d   :  { %4814 = vmatprep.subr.bf16.mxu1 %v6470_v55  ;;  %v6733_v52 = vpop.f32.mrf.mxu0 }
 0x25e   :  { %v6735_v53 = vpop.f32.mrf.mxu1 }
 0x25f   :  { %4772 = vmatpush1.bf16.msra.mxu0 %v6465_v56  ;;  %v4115_v54 = vpop.f32.mrf.mxu0 }
 0x260   :  { %4815 = vmatpush1.bf16.msra.mxu1 %v6468_v57  ;;  %4773 = vmatprep.subr.bf16.mxu0 %v6473_v58  ;;  %v4158_v55 = vpop.f32.mrf.mxu1 }
 0x261   :  { %4816 = vmatprep.subr.bf16.mxu1 %v6476_v59  ;;  %v6737_v56 = vpop.f32.mrf.mxu0 }
 0x262   :  { %v6739_v57 = vpop.f32.mrf.mxu1 }
 0x263   :  { %4774 = vmatpush1.bf16.msra.mxu0 %v6471_v60  ;;  %v4197_v58 = vpop.f32.mrf.mxu0 }
 0x264   :  { %4817 = vmatpush1.bf16.msra.mxu1 %v6474_v61  ;;  %4775 = vmatprep.subr.bf16.mxu0 %v6479_v62  ;;  %v4240_v59 = vpop.f32.mrf.mxu1 }
 0x265   :  { %4818 = vmatprep.subr.bf16.mxu1 %v6482_v63  ;;  %v6741_v60 = vpop.f32.mrf.mxu0 }
 0x266   :  { %v6743_v61 = vpop.f32.mrf.mxu1 }
 0x267   :  { %4776 = vmatpush1.bf16.msra.mxu0 %v6477_v0  ;;  %v4201_v62 = vpop.f32.mrf.mxu0 }
 0x268   :  { %4819 = vmatpush1.bf16.msra.mxu1 %v6480_v1  ;;  %4777 = vmatprep.subr.bf16.mxu0 %v6485_v2  ;;  %v6745_v63 = vpop.f32.mrf.mxu1 }
 0x269   :  { %4820 = vmatprep.subr.bf16.mxu1 %v6488_v3  ;;  %v6747_v0 = vpop.f32.mrf.mxu0 }
 0x26a   :  { %v6749_v1 = vpop.f32.mrf.mxu1 }
 0x26b   :  { %4778 = vmatpush1.bf16.msra.mxu0 %v6483_v4  ;;  %v4283_v2 = vpop.f32.mrf.mxu0 }
 0x26c   :  { %4821 = vmatpush1.bf16.msra.mxu1 %v6486_v5  ;;  %4779 = vmatprep.subr.bf16.mxu0 %v6491_v6  ;;  %v6751_v3 = vpop.f32.mrf.mxu1 }
 0x26d   :  { %4822 = vmatprep.subr.bf16.mxu1 %v6494_v7  ;;  %v6753_v4 = vpop.f32.mrf.mxu0 }
 0x26e   :  { %6816 = vst [vmem:[#allocation6_spill] sm:$0xff] %v6753_v4  ;;  %v6755_v5 = vpop.f32.mrf.mxu1 }
 0x26f   :  { %4780 = vmatpush2.bf16.msra.mxu0 %v6489_v8  ;;  %6817 = vst [vmem:[#allocation7_spill] sm:$0xff] %v6755_v5  ;;  %v6757_v6 = vpop.f32.mrf.mxu0 }
 0x270   :  { %4823 = vmatpush2.bf16.msra.mxu1 %v6492_v9  ;;  %4781 = vmatprep.subr.bf16.mxu0 %v6497_v10  ;;  %v6759_v7 = vpop.f32.mrf.mxu1 }
 0x271   :  { %4824 = vmatprep.subr.bf16.mxu1 %v6500_v11  ;;  %v6761_v8 = vpop.f32.mrf.mxu0 }
 0x272   :  { %6818 = vst [vmem:[#allocation8_spill] sm:$0xff] %v6761_v8  ;;  %v6763_v9 = vpop.f32.mrf.mxu1 }
 0x273   :  { %4782 = vmatpush2.bf16.msra.mxu0 %v6495_v12  ;;  %6819 = vst [vmem:[#allocation9_spill] sm:$0xff] %v6763_v9  ;;  %v6765_v10 = vpop.f32.mrf.mxu0 }
 0x274   :  { %4825 = vmatpush2.bf16.msra.mxu1 %v6498_v13  ;;  %4783 = vmatprep.subr.bf16.mxu0 %v6503_v14  ;;  %v6767_v11 = vpop.f32.mrf.mxu1 }
 0x275   :  { %4826 = vmatprep.subr.bf16.mxu1 %v6506_v15  ;;  %6820 = vst [vmem:[#allocation10_spill] sm:$0xff] %v6767_v11  ;;  %v6769_v12 = vpop.f32.mrf.mxu0  ;;  %v4071_v11 = vadd.f32 %v6729_v45, %v6727_v44 }
 0x276   :  { %6821 = vst [vmem:[#allocation11_spill] sm:$0xff] %v6769_v12  ;;  %v6771_v13 = vpop.f32.mrf.mxu1 }
 0x277   :  { %4784 = vmatpush2.bf16.msra.mxu0 %v6501_v16  ;;  %6822 = vst [vmem:[#allocation12_spill] sm:$0xff] %v6771_v13  ;;  %v6773_v14 = vpop.f32.mrf.mxu0 }
 0x278   :  { %4827 = vmatpush2.bf16.msra.mxu1 %v6504_v17  ;;  %4785 = vmatprep.subr.bf16.mxu0 %v6509_v18  ;;  %6823 = vst [vmem:[#allocation13_spill] sm:$0xff] %v6773_v14  ;;  %v6775_v15 = vpop.f32.mrf.mxu1 }
 0x279   :  { %4828 = vmatprep.subr.bf16.mxu1 %v6512_v19  ;;  %6824 = vst [vmem:[#allocation14_spill] sm:$0xff] %v6775_v15  ;;  %v4453_v16 = vpop.f32.mrf.mxu0 }
 0x27a   :  { %v4496_v17 = vpop.f32.mrf.mxu1 }
 0x27b   :  { %4786 = vmatpush2.bf16.msra.mxu0 %v6507_v20  ;;  %v4455_v18 = vpop.f32.mrf.mxu0  ;;  %v4497_v14 = vadd.f32 %v4496_v17, %v4453_v16 }
 0x27c   :  { %4829 = vmatpush2.bf16.msra.mxu1 %v6510_v21  ;;  %4787 = vmatprep.subr.bf16.mxu0 %v6515_v22  ;;  %v4498_v19 = vpop.f32.mrf.mxu1 }
 0x27d   :  { %4830 = vmatprep.subr.bf16.mxu1 %v6518_v23  ;;  %v4457_v20 = vpop.f32.mrf.mxu0 }
 0x27e   :  { %v4500_v21 = vpop.f32.mrf.mxu1 }
 0x27f   :  { %4788 = vmatpush2.bf16.msra.mxu0 %v6513_v24  ;;  %v4459_v22 = vpop.f32.mrf.mxu0 }
 0x280   :  { %4831 = vmatpush2.bf16.msra.mxu1 %v6516_v25  ;;  %4789 = vmatprep.subr.bf16.mxu0 %v6521_v26  ;;  %v4502_v23 = vpop.f32.mrf.mxu1 }
 0x281   :  { %4832 = vmatprep.subr.bf16.mxu1 %v6524_v27  ;;  %v4503_v17 = vadd.f32 %v4502_v23, %v4459_v22 }
 0x283   :  { %4790 = vmatpush2.bf16.msra.mxu0 %v6519_v28 }
 0x284   :  { %4833 = vmatpush2.bf16.msra.mxu1 %v6522_v29  ;;  %4791 = vmatprep.subr.bf16.mxu0 %v6527_v30 }
 0x285   :  { %4834 = vmatprep.subr.bf16.mxu1 %v6530_v31 }
 0x287   :  { %4792 = vmatpush2.bf16.msra.mxu0 %v6525_v32  ;;  %v4069_v32 = vadd.f32 %v4068_v43, %v4025_v42  ;;  %v4499_v42 = vadd.f32 %v4498_v19, %v4455_v18 }
 0x288   :  { %4835 = vmatpush2.bf16.msra.mxu1 %v6528_v33  ;;  %4793 = vmatprep.subr.bf16.mxu0 %v6533_v34 }
 0x289   :  { %4836 = vmatprep.subr.bf16.mxu1 %v6536_v35  ;;  %v4112_v35 = vadd.f32 %v4111_v50, %v4069_v32 }
 0x28b   :  { %4794 = vmatpush2.bf16.msra.mxu0 %v6531_v36  ;;  %v4073_v36 = vadd.f32 %v4072_v47, %v4029_v46  ;;  %v4155_v13 = vadd.f32 %v4154_v51, %v4112_v35  ;;  %v4114_v46 = vadd.f32 %v6733_v52, %v4071_v11  ;;  %v4501_v51 = vadd.f32 %v4500_v21, %v4457_v20 }
 0x28c   :  { %4837 = vmatpush2.bf16.msra.mxu1 %v6534_v37 }
 0x28d   :  { %v4116_v12 = vadd.f32 %v4115_v54, %v4073_v36  ;;  %v4198_v15 = vadd.f32 %v4197_v58, %v4155_v13  ;;  %v6829_v36 = vld [vmem:[#allocation7_spill] sm:$0xff] }
 0x28e   :  { %4796 = vmatmul.mubr.bf16.vlgmr.msra.gmra.mxu0 %v6555_v38  ;;  %v4539_v24 = vpop.f32.mrf.mxu0 }
 0x28f   :  { %4839 = vmatmul.mubr.bf16.vlgmr.msra.gmra.mxu1 %v6556_v39  ;;  %v4582_v25 = vpop.f32.mrf.mxu1  ;;  %v4067_v39 = vadd.f32 %v4066_v41, %v6725_v40  ;;  %v4159_v4 = vadd.f32 %v4158_v55, %v4116_v12  ;;  %v4540_v43 = vadd.f32 %v4539_v24, %v4497_v14  ;;  %v4241_v47 = vadd.f32 %v4240_v59, %v4198_v15 }
 0x290   :  { %v4541_v26 = vpop.f32.mrf.mxu0  ;;  %v4157_v55 = vadd.f32 %v6735_v53, %v4114_v46 }
 0x291   :  { %v4584_v27 = vpop.f32.mrf.mxu1  ;;  %v4110_v9 = vadd.f32 %v4109_v48, %v4067_v39  ;;  %v4202_v32 = vadd.f32 %v4201_v62, %v4159_v4  ;;  %v4542_v48 = vadd.f32 %v4541_v26, %v4499_v42  ;;  %v4284_v58 = vadd.f32 %v4283_v2, %v4241_v47  ;;  %v6830_v39 = vld [vmem:[#allocation14_spill] sm:$0xff] }
 0x292   :  { %v4543_v28 = vpop.f32.mrf.mxu0  ;;  %v4583_v44 = vadd.f32 %v4582_v25, %v4540_v43  ;;  %v4200_v4 = vadd.f32 %v6741_v60, %v4157_v55  ;;  %v6825_v25 = vld [vmem:[#allocation6_spill] sm:$0xff] }
 0x293   :  { %v4586_v29 = vpop.f32.mrf.mxu1  ;;  %v4153_v50 = vadd.f32 %v6731_v49, %v4110_v9  ;;  %v4544_v45 = vadd.f32 %v4543_v28, %v4501_v51  ;;  %v4245_v49 = vadd.f32 %v6745_v63, %v4202_v32  ;;  %v4585_v9 = vadd.f32 %v4584_v27, %v4542_v48  ;;  %v6826_v27 = vld [vmem:[#allocation10_spill] sm:$0xff]  ;;  %v6827_v28 = vld [vmem:[#allocation13_spill] sm:$0xff] }
 0x294   :  { %v4545_v30 = vpop.f32.mrf.mxu0  ;;  %v4327_v11 = vadd.f32 %v6751_v3, %v4284_v58  ;;  %v4243_v21 = vadd.f32 %v6743_v61, %v4200_v4  ;;  %v6831_v32 = vld [vmem:[#allocation9_spill] sm:$0xff] }
 0x295   :  { %v4588_v31 = vpop.f32.mrf.mxu1  ;;  %v4196_v54 = vadd.f32 %v6737_v56, %v4153_v50  ;;  %v4546_v52 = vadd.f32 %v4545_v30, %v4503_v17  ;;  %v4288_v56 = vadd.f32 %v6757_v6, %v4245_v49  ;;  %v4587_v14 = vadd.f32 %v4586_v29, %v4544_v45 }
 0x296   :  { %v4370_v53 = vadd.f32 %v6765_v10, %v4327_v11  ;;  %v4286_v26 = vadd.f32 %v6825_v25, %v4243_v21 }
 0x297   :  { %v4239_v62 = vadd.f32 %v6739_v57, %v4196_v54  ;;  %v4589_v63 = vadd.f32 %v4588_v31, %v4546_v52  ;;  %v4331_v57 = vadd.f32 %v6759_v7, %v4288_v56 }
 0x299   :  { %v4282_v18 = vadd.f32 %v6747_v0, %v4239_v62  ;;  %v4413_v0 = vadd.f32 %v6826_v27, %v4370_v53  ;;  %v4374_v10 = vadd.f32 %v6827_v28, %v4331_v57 }
 0x29b   :  { %v4325_v24 = vadd.f32 %v6749_v1, %v4282_v18  ;;  %v4417_v1 = vadd.f32 %v6830_v39, %v4374_v10 }
 0x29d   :  { %v4852_v17 = vrot.slane %v4417_v1, 1 }
 0x2ce   :  { %v4625_v33 = vpop.f32.mrf.mxu0 }
 0x2cf   :  { %v4668_v34 = vpop.f32.mrf.mxu1  ;;  %v4626_v59 = vadd.f32 %v4625_v33, %v4583_v44 }
 0x2d0   :  { %v4627_v37 = vpop.f32.mrf.mxu0 }
 0x2d1   :  { %v4670_v38 = vpop.f32.mrf.mxu1  ;;  %v4628_v15 = vadd.f32 %v4627_v37, %v4585_v9  ;;  %v4669_v19 = vadd.f32 %v4668_v34, %v4626_v59  ;;  %v4329_v37 = vadd.f32 %v6829_v36, %v4286_v26  ;;  %v6833_v59 = vld [vmem:[#allocation12_spill] sm:$0xff] }
 0x2d2   :  { %v4629_v5 = vpop.f32.mrf.mxu0 }
 0x2d3   :  { %v4672_v8 = vpop.f32.mrf.mxu1  ;;  %v4630_v20 = vadd.f32 %v4629_v5, %v4587_v14  ;;  %v4671_v3 = vadd.f32 %v4670_v38, %v4628_v15  ;;  %v6828_v5 = vld [vmem:[#allocation8_spill] sm:$0xff]  ;;  %v4851_v38 = vrot.slane %v4413_v0, 1  ;;  %v4874_v14 = vstv %s6814_s2 }
 0x2d4   :  { %v4631_v40 = vpop.f32.mrf.mxu0  ;;  %v4368_v31 = vadd.f32 %v6828_v5, %v4325_v24 }
 0x2d5   :  { %v4674_v41 = vpop.f32.mrf.mxu1  ;;  %v4632_v23 = vadd.f32 %v4631_v40, %v4589_v63  ;;  %v4673_v29 = vadd.f32 %v4672_v8, %v4630_v20  ;;  %v6832_v40 = vld [vmem:[#allocation11_spill] sm:$0xff] }
 0x2d6   :  { %v4411_v8 = vadd.f32 %v6831_v32, %v4368_v31  ;;  %v4372_v51 = vadd.f32 %v6832_v40, %v4329_v37 }
 0x2d7   :  { %v4675_v7 = vadd.f32 %v4674_v41, %v4632_v23 }
 0x2d8   :  { %v4415_v62 = vadd.f32 %v6833_v59, %v4372_v51 }
 0x2da   :  { %v4856_v18 = vadd.f32 %v4852_v17, %v4415_v62 }
 0x30e   :  { %v4711_v13 = vpop.f32.mrf.mxu0 }
 0x30f   :  { %v4754_v16 = vpop.f32.mrf.mxu1  ;;  %v4712_v6 = vadd.f32 %v4711_v13, %v4669_v19 }
 0x310   :  { %v4713_v2 = vpop.f32.mrf.mxu0 }
 0x311   :  { %v4756_v12 = vpop.f32.mrf.mxu1  ;;  %v4714_v30 = vadd.f32 %v4713_v2, %v4671_v3  ;;  %v4755_v34 = vadd.f32 %v4754_v16, %v4712_v6  ;;  %v4855_v16 = vadd.f32 %v4851_v38, %v4411_v8 }
 0x312   :  { %v4715_v60 = vpop.f32.mrf.mxu0 }
 0x313   :  { %v4758_v22 = vpop.f32.mrf.mxu1  ;;  %v4716_v35 = vadd.f32 %v4715_v60, %v4673_v29  ;;  %v4757_v50 = vadd.f32 %v4756_v12, %v4714_v30 }
 0x314   :  { %v4717_v61 = vpop.f32.mrf.mxu0 }
 0x315   :  { %v4760_v33 = vpop.f32.mrf.mxu1  ;;  %v4718_v46 = vadd.f32 %v4717_v61, %v4675_v7  ;;  %v4759_v58 = vadd.f32 %v4758_v22, %v4716_v35 }
 0x317   :  { %v4761_v55 = vadd.f32 %v4760_v33, %v4718_v46 }
 0x34e   :  { %v4797_v42 = vpop.f32.mrf.mxu0 }
 0x34f   :  { %v4840_v43 = vpop.f32.mrf.mxu1  ;;  %v4798_v47 = vadd.f32 %v4797_v42, %v4755_v34 }
 0x350   :  { %v4799_v48 = vpop.f32.mrf.mxu0 }
 0x351   :  { %v4842_v54 = vpop.f32.mrf.mxu1  ;;  %v4841_v41 = vadd.f32 %v4840_v43, %v4798_v47  ;;  %v4800_v13 = vadd.f32 %v4799_v48, %v4757_v50 }
 0x352   :  { %v4801_v44 = vpop.f32.mrf.mxu0 }
 0x353   :  { %v4844_v45 = vpop.f32.mrf.mxu1  ;;  %v4859_v49 = vrot.slane %v4841_v41, 2  ;;  %v4843_v9 = vadd.f32 %v4842_v54, %v4800_v13  ;;  %v4802_v52 = vadd.f32 %v4801_v44, %v4759_v58 }
 0x354   :  { %v4803_v4 = vpop.f32.mrf.mxu0 }
 0x355   :  { %v4863_v11 = vadd.f32 %v4859_v49, %v4855_v16  ;;  %v4867_v56 = vrot.slane %v4843_v9, 3  ;;  %v4845_v2 = vadd.f32 %v4844_v45, %v4802_v52  ;;  %v4804_v12 = vadd.f32 %v4803_v4, %v4761_v55  ;;  %v4846_v15 = vpop.f32.mrf.mxu1 }
 0x357   :  { %v4871_v53 = vadd.f32 %v4867_v56, %v4863_v11  ;;  %v4860_v63 = vrot.slane %v4845_v2, 2  ;;  %v4847_v19 = vadd.f32 %v4846_v15, %v4804_v12 }
 0x359   :  { %v4875_v20 = vadd.f32 %v4874_v14, %v4871_v53  ;;  %v4864_v21 = vadd.f32 %v4860_v63, %v4856_v18  ;;  %v4868_v57 = vrot.slane %v4847_v19, 3 }
 0x35b   :  { %4877 = vst [vmem:[%s6815_s3] sm:$0x1f] %v4875_v20  ;;  %v4872_v60 = vadd.f32 %v4868_v57, %v4864_v21 }
 0x35d   :  { %v4876_v22 = vadd.f32 %v4874_v14, %v4872_v60 }
 0x35f   :  { %4878 = vst [vmem:[%s6815_s3 + $0x8] sm:$0x1f] %v4876_v22 }
 0x360   :  { %4883 = vsyncpa [#allocation4], 1 }

</bundles_post_ra>
